<compile_context>
chip_gen: v7x
topology: tpu7x:2x2x1
jax: 0.10.0
libtpu: 0.0.40
codegen_flags: <defaults>
</compile_context>

<pallas_src>
import jax
import jax.numpy as jnp
from jax.experimental import pallas as pl
from jax.experimental.pallas import tpu as pltpu


# bf16 matmul inputs (2x MXU throughput on v5e/v6e/v7x); accumulation stays
# float32 via preferred_element_type.
DOT_DTYPE = jnp.bfloat16
SCRATCH_DTYPE = jnp.bfloat16
SUBLANE = 16            # bf16 sublane packing (tile is (16, 128))

# Python float (NOT a jnp array) so the kernel does not capture a constant.
# Finite "-inf" surrogate for maxpool padding; representable in bf16.
_NEG = -3.0e38


def _round_up(x, m):
    return ((x + m - 1) // m) * m


# ----------------------------------------------------------------------------
# Fused Inception kernel (one grid step = one image)
# ----------------------------------------------------------------------------
def _make_inception_kernel(cin, H, W, m0, sizes, cpads, dot_dtype=DOT_DTYPE):
    n1x1, n3x3red, n3x3, n5x5red, n5x5, pool_planes = sizes
    cpad2, cpad3a, cpad3b = cpads               # padded tap strides per 3x3 conv
    HW = H * W
    c1x1 = n1x1 + n3x3red + n5x5red
    cconv = max(n3x3red, n5x5red, n5x5)         # rows whose margins the convs read

    def dot32(a, b):
        return jnp.dot(a.astype(dot_dtype), b.astype(dot_dtype),
                       preferred_element_type=jnp.float32)

    def kernel(x_ref, w1_ref, b1_ref, w2_ref, b2_ref,
               w3a_ref, b3a_ref, w3b_ref, b3b_ref, w4_ref, b4_ref,
               o_ref, flat_ref, patch_ref):
        # x_ref:    (1, cin, HW) f32     lane dim = HW (dense)
        # w*/b*:    folded conv+BN weights (bf16) / biases (f32, (Cout, 1))
        # o_ref:    (1, Ctot, HW) f32    concatenated output block
        # flat_ref: (cmax, 2*m0+HW) bf16 margin scratch for spatial shifts
        # patch_ref:(9*cpad_max, HW) bf16 im2col slab (tap stride = cpad_i)
        x = x_ref[0]                                       # (cin, HW) f32

        # In-kernel lane-position masks (no HBM mask input): True where the
        # pixel has a valid left / right neighbour within its image row.
        wcol = jax.lax.broadcasted_iota(jnp.int32, (1, HW), 1) % W
        has_left = wcol >= 1
        has_right = wcol <= W - 2

        def shifted(c, kh, kw, fill):
            # value at spatial offset (kh-1, kw-1); `fill` outside the image.
            off = m0 + (kh - 1) * W + (kw - 1)
            s = flat_ref[0:c, off:off + HW]
            if kw == 0:                                    # dw = -1
                s = jnp.where(has_left, s, fill)
            elif kw == 2:                                  # dw = +1
                s = jnp.where(has_right, s, fill)
            return s

        def clear_margins(rows, fill):
            # Only the two margin bands; the interior is overwritten anyway.
            flat_ref[0:rows, 0:m0] = jnp.full((rows, m0), fill, flat_ref.dtype)
            flat_ref[0:rows, m0 + HW:2 * m0 + HW] = jnp.full(
                (rows, m0), fill, flat_ref.dtype)

        def conv3x3_bn_relu(t, c, cpad, w_ref_, b_ref_):
            # t: (c, HW) f32 -> relu(conv3x3(t, pad=1)*scale + bias): (cout, HW)
            flat_ref[0:c, m0:m0 + HW] = t.astype(flat_ref.dtype)
            for kh in range(3):
                for kw in range(3):
                    base = (kh * 3 + kw) * cpad            # tile-aligned stride
                    patch_ref[base:base + c, :] = shifted(c, kh, kw, 0.0)
                    if cpad > c:                           # keep pad rows finite
                        patch_ref[base + c:base + cpad, :] = jnp.zeros(
                            (cpad - c, HW), patch_ref.dtype)
            y = dot32(w_ref_[...], patch_ref[0:9 * cpad, :])  # (cout,9cpad)@(...,HW)
            return jnp.maximum(y + b_ref_[...], 0.0)

        # ---- branch 1 + reductions of branches 2/3: one fused 1x1 matmul ----
        y0 = jnp.maximum(dot32(w1_ref[...], x) + b1_ref[...], 0.0)  # (c1x1, HW) f32
        o_ref[0, 0:n1x1, :] = y0[0:n1x1, :]
        t2 = y0[n1x1:n1x1 + n3x3red, :]                    # (n3x3red, HW)
        t3 = y0[n1x1 + n3x3red:c1x1, :]                    # (n5x5red, HW)

        # Zero the margin bands once for all three 3x3 convs (the maxpool of
        # the previous grid step left -inf there).
        clear_margins(cconv, 0.0)

        # ---- branch 2: 1x1 -> 3x3 ----
        o_ref[0, n1x1:n1x1 + n3x3, :] = conv3x3_bn_relu(
            t2, n3x3red, cpad2, w2_ref, b2_ref)

        # ---- branch 3: 1x1 -> 3x3 -> 3x3 ----
        u = conv3x3_bn_relu(t3, n5x5red, cpad3a, w3a_ref, b3a_ref)
        c0 = n1x1 + n3x3
        o_ref[0, c0:c0 + n5x5, :] = conv3x3_bn_relu(
            u, n5x5, cpad3b, w3b_ref, b3b_ref)

        # ---- branch 4: 3x3/s1/p1 maxpool (separable) -> 1x1 conv ----
        clear_margins(cin, _NEG)
        flat_ref[0:cin, m0:m0 + HW] = x.astype(flat_ref.dtype)
        vmax = jnp.maximum(
            jnp.maximum(flat_ref[0:cin, m0 - W:m0 - W + HW],
                        flat_ref[0:cin, m0:m0 + HW]),
            flat_ref[0:cin, m0 + W:m0 + W + HW])           # vertical 3-max
        flat_ref[0:cin, m0:m0 + HW] = vmax
        m = jnp.maximum(jnp.maximum(shifted(cin, 1, 0, _NEG), vmax),
                        shifted(cin, 1, 2, _NEG))          # horizontal 3-max
        c1 = c0 + n5x5
        o_ref[0, c1:c1 + pool_planes, :] = jnp.maximum(
            dot32(w4_ref[...], m) + b4_ref[...], 0.0)

    return kernel


# ----------------------------------------------------------------------------
# Wrapper
# ----------------------------------------------------------------------------
def _full_spec(arr):
    zeros = (0,) * arr.ndim
    return pl.BlockSpec(arr.shape, lambda n: zeros)


def prepare_kernel_params(params, w_dtype=DOT_DTYPE):
    """Rearrange folded (OIHW weight, bias) params into the kernel layout."""
    def as1x1(p):
        w, b = p                                   # (Cout, Cin, 1, 1), (Cout,)
        return (w.reshape(w.shape[0], w.shape[1]).astype(w_dtype),
                b.reshape(-1, 1).astype(jnp.float32))

    def as3x3(p):
        w, b = p                                   # (Cout, Cin, 3, 3)
        cout, cin = w.shape[0], w.shape[1]
        cpad = _round_up(cin, SUBLANE)             # match padded tap stride
        wm = jnp.transpose(w, (0, 2, 3, 1)).reshape(cout, 9, cin)
        wm = jnp.pad(wm, ((0, 0), (0, 0), (0, cpad - cin)))
        return (wm.reshape(cout, 9 * cpad).astype(w_dtype),
                b.reshape(-1, 1).astype(jnp.float32))

    w_b1, b_b1 = as1x1(params["b1"])
    w_b21, b_b21 = as1x1(params["b2_1"])
    w_b31, b_b31 = as1x1(params["b3_1"])
    w1 = jnp.concatenate([w_b1, w_b21, w_b31], axis=0)   # fused shared-input 1x1
    b1 = jnp.concatenate([b_b1, b_b21, b_b31], axis=0)
    w2, b2 = as3x3(params["b2_2"])
    w3a, b3a = as3x3(params["b3_2"])
    w3b, b3b = as3x3(params["b3_3"])
    w4, b4 = as1x1(params["b4"])
    return [w1, b1, w2, b2, w3a, b3a, w3b, b3b, w4, b4]


def inception_forward(x_nchw, params, sizes):
    n1x1, n3x3red, n3x3, n5x5red, n5x5, pool_planes = sizes
    N, cin, H, W = x_nchw.shape
    HW = H * W
    ctot = n1x1 + n3x3 + n5x5 + pool_planes
    cmax = max(cin, n3x3red, n5x5red, n5x5)        # rows of flat scratch
    cpads = tuple(_round_up(c, SUBLANE) for c in (n3x3red, n5x5red, n5x5))
    cpad_max = max(cpads)                          # per-tap row stride (padded)
    m0 = _round_up(W + 1, 128)                     # lane-aligned pad margin

    # Free reshape (contiguous); x stays f32 in HBM and is cast to bf16 inside
    # the kernel (a wrapper-side convert would add an extra HBM round trip; in
    # a full network the activations would already arrive in bf16).
    x = x_nchw.reshape(N, cin, HW)
    kparams = prepare_kernel_params(params)

    kernel = _make_inception_kernel(cin, H, W, m0, sizes, cpads)
    in_specs = ([pl.BlockSpec((1, cin, HW), lambda n: (n, 0, 0))]
                + [_full_spec(a) for a in kparams])

    out = pl.pallas_call(
        kernel,
        out_shape=jax.ShapeDtypeStruct((N, ctot, HW), jnp.float32),
        grid=(N,),
        in_specs=in_specs,
        out_specs=pl.BlockSpec((1, ctot, HW), lambda n: (n, 0, 0)),
        scratch_shapes=[pltpu.VMEM((cmax, 2 * m0 + HW), SCRATCH_DTYPE),
                        pltpu.VMEM((9 * cpad_max, HW), SCRATCH_DTYPE)],
        # Batch grid keeps both v7x TensorCores busy for N >= 2.  Explicit VMEM
        # budget (also lifts v5e's 16 MiB scoped default); stays well under
        # v7x's 64 MiB physical VMEM.  For real GoogLeNet widths, also tile the
        # grid over H row-blocks and re-derive the budget per generation.
        compiler_params=pltpu.CompilerParams(
            dimension_semantics=("parallel",),
            vmem_limit_bytes=48 * 1024 * 1024),
    )(x, *kparams)
    return out.reshape(N, ctot, H, W)


# ----------------------------------------------------------------------------
# Parameter init (deterministic) + eval-mode BN folding
# ----------------------------------------------------------------------------
def fold_bn(w, conv_b, gamma, beta, mean, var, eps=1e-5):
    scale = gamma / jnp.sqrt(var + eps)            # (Cout,)
    w_f = w * scale[:, None, None, None]           # OIHW
    b_f = (conv_b - mean) * scale + beta
    return w_f.astype(jnp.float32), b_f.astype(jnp.float32)


def init_conv_bn(key, cin, cout, k):
    k1, k2, k3, k4, k5, k6 = jax.random.split(key, 6)
    w = 0.2 * jax.random.normal(k1, (cout, cin, k, k), jnp.float32)
    conv_b = 0.1 * jax.random.normal(k2, (cout,), jnp.float32)
    gamma = 1.0 + 0.1 * jax.random.normal(k3, (cout,), jnp.float32)
    beta = 0.1 * jax.random.normal(k4, (cout,), jnp.float32)
    mean = 0.05 * jax.random.normal(k5, (cout,), jnp.float32)
    var = 0.5 + jax.random.uniform(k6, (cout,), jnp.float32)
    return fold_bn(w, conv_b, gamma, beta, mean, var)


def init_params(key, in_planes, n1x1, n3x3red, n3x3, n5x5red, n5x5, pool_planes):
    ks = jax.random.split(key, 7)
    return {
        "b1":   init_conv_bn(ks[0], in_planes, n1x1, 1),
        "b2_1": init_conv_bn(ks[1], in_planes, n3x3red, 1),
        "b2_2": init_conv_bn(ks[2], n3x3red, n3x3, 3),
        "b3_1": init_conv_bn(ks[3], in_planes, n5x5red, 1),
        "b3_2": init_conv_bn(ks[4], n5x5red, n5x5, 3),
        "b3_3": init_conv_bn(ks[5], n5x5, n5x5, 3),
        "b4":   init_conv_bn(ks[6], in_planes, pool_planes, 1),
    }


# ----------------------------------------------------------------------------
# Pure-JAX reference (NCHW / OIHW, folded params, f32) for validation
# ----------------------------------------------------------------------------
def _ref_conv_bn_relu(x, w, b, pad):
    y = jax.lax.conv_general_dilated(
        x, w, window_strides=(1, 1), padding=[(pad, pad), (pad, pad)],
        dimension_numbers=("NCHW", "OIHW", "NCHW"))
    return jnp.maximum(y + b.reshape(1, -1, 1, 1), 0.0)


def _ref_maxpool3x3(x):
    return jax.lax.reduce_window(
        x, -jnp.inf, jax.lax.max, (1, 1, 3, 3), (1, 1, 1, 1),
        padding=((0, 0), (0, 0), (1, 1), (1, 1)))


def inception_ref(x, params):
    y1 = _ref_conv_bn_relu(x, *params["b1"], 0)
    t = _ref_conv_bn_relu(x, *params["b2_1"], 0)
    y2 = _ref_conv_bn_relu(t, *params["b2_2"], 1)
    t = _ref_conv_bn_relu(x, *params["b3_1"], 0)
    t = _ref_conv_bn_relu(t, *params["b3_2"], 1)
    y3 = _ref_conv_bn_relu(t, *params["b3_3"], 1)
    y4 = _ref_conv_bn_relu(_ref_maxpool3x3(x), *params["b4"], 0)
    return jnp.concatenate([y1, y2, y3, y4], axis=1)


# ----------------------------------------------------------------------------
if __name__ == "__main__":
    key = jax.random.PRNGKey(0)
    N, Cin, H, W = 2, 4, 16, 16
    sizes = (8, 4, 8, 4, 8, 8)   # n1x1, n3x3red, n3x3, n5x5red, n5x5, pool_planes
    n1x1, n3x3red, n3x3, n5x5red, n5x5, pool_planes = sizes

    kx, kp = jax.random.split(key)
    x_nchw = jax.random.normal(kx, (N, Cin, H, W), jnp.float32)
    params = init_params(kp, Cin, *sizes)

    out = inception_forward(x_nchw, params, sizes)
    out = jax.block_until_ready(out)

    ref = inception_ref(x_nchw, params)
    assert out.shape == (N, n1x1 + n3x3 + n5x5 + pool_planes, H, W), out.shape
    # Tolerance sized for bf16 matmul inputs (f32 accumulation), incl. the
    # stacked 3x3 convs in branch 3.
    assert jnp.allclose(out, ref, atol=5e-2, rtol=5e-2), float(
        jnp.max(jnp.abs(out - ref)))

    print("KERNEL_OK")
</pallas_src>

<mosaic_0001>
module attributes {stable_mosaic.version = 11 : i64} {
  func.func @kernel(%arg0: i32, %arg1: memref<1x4x256xf32, #tpu.memory_space<vmem>>, %arg2: memref<16x4xbf16, #tpu.memory_space<vmem>>, %arg3: memref<16x1xf32, #tpu.memory_space<vmem>>, %arg4: memref<8x144xbf16, #tpu.memory_space<vmem>>, %arg5: memref<8x1xf32, #tpu.memory_space<vmem>>, %arg6: memref<8x144xbf16, #tpu.memory_space<vmem>>, %arg7: memref<8x1xf32, #tpu.memory_space<vmem>>, %arg8: memref<8x144xbf16, #tpu.memory_space<vmem>>, %arg9: memref<8x1xf32, #tpu.memory_space<vmem>>, %arg10: memref<8x4xbf16, #tpu.memory_space<vmem>>, %arg11: memref<8x1xf32, #tpu.memory_space<vmem>>, %arg12: memref<1x32x256xf32, #tpu.memory_space<vmem>>, %arg13: memref<8x512xbf16, #tpu.memory_space<vmem>>, %arg14: memref<144x256xbf16, #tpu.memory_space<vmem>>) attributes {dimension_semantics = [#tpu.dimension_semantics<parallel>], iteration_bounds = array<i64: 2>, scalar_prefetch = 0 : i64, scratch_operands = 2 : i64, tpu.core_type = #tpu.core_type<tc>, window_params = [{transform_indices = @transform_0, window_bounds = array<i64: 1, 4, 256>}, {pipeline_mode = #tpu.pipeline_mode<synchronous>, transform_indices = @transform_1, window_bounds = array<i64: 16, 4>}, {pipeline_mode = #tpu.pipeline_mode<synchronous>, transform_indices = @transform_2, window_bounds = array<i64: 16, 1>}, {pipeline_mode = #tpu.pipeline_mode<synchronous>, transform_indices = @transform_3, window_bounds = array<i64: 8, 144>}, {pipeline_mode = #tpu.pipeline_mode<synchronous>, transform_indices = @transform_4, window_bounds = array<i64: 8, 1>}, {pipeline_mode = #tpu.pipeline_mode<synchronous>, transform_indices = @transform_5, window_bounds = array<i64: 8, 144>}, {pipeline_mode = #tpu.pipeline_mode<synchronous>, transform_indices = @transform_6, window_bounds = array<i64: 8, 1>}, {pipeline_mode = #tpu.pipeline_mode<synchronous>, transform_indices = @transform_7, window_bounds = array<i64: 8, 144>}, {pipeline_mode = #tpu.pipeline_mode<synchronous>, transform_indices = @transform_8, window_bounds = array<i64: 8, 1>}, {pipeline_mode = #tpu.pipeline_mode<synchronous>, transform_indices = @transform_9, window_bounds = array<i64: 8, 4>}, {pipeline_mode = #tpu.pipeline_mode<synchronous>, transform_indices = @transform_10, window_bounds = array<i64: 8, 1>}, {transform_indices = @transform_11, window_bounds = array<i64: 1, 32, 256>}]} {
    %c0 = arith.constant 0 : index
    %c0_0 = arith.constant 0 : index
    %c0_1 = arith.constant 0 : index
    %0 = vector.load %arg1[%c0, %c0_0, %c0_1] : memref<1x4x256xf32, #tpu.memory_space<vmem>>, vector<1x4x256xf32>
    %1 = vector.shape_cast %0 : vector<1x4x256xf32> to vector<4x256xf32>
    %2 = tpu.iota {dimensions = array<i32: 1>} : vector<1x256xi32>
    %c16_i32 = arith.constant 16 : i32
    %c0_i32 = arith.constant 0 : i32
    %3 = arith.cmpi eq, %c16_i32, %c0_i32 : i32
    %c1_i32 = arith.constant 1 : i32
    %4 = arith.select %3, %c1_i32, %c16_i32 : i32
    %5 = vector.broadcast %4 : i32 to vector<1x256xi32>
    %6 = arith.remsi %2, %5 : vector<1x256xi32>
    %c0_i32_2 = arith.constant 0 : i32
    %7 = vector.broadcast %c0_i32_2 : i32 to vector<1x256xi32>
    %8 = arith.cmpi ne, %6, %7 : vector<1x256xi32>
    %c0_i32_3 = arith.constant 0 : i32
    %9 = vector.broadcast %c0_i32_3 : i32 to vector<1x256xi32>
    %10 = arith.cmpi slt, %6, %9 : vector<1x256xi32>
    %c0_i32_4 = arith.constant 0 : i32
    %11 = arith.cmpi slt, %4, %c0_i32_4 : i32
    %12 = vector.broadcast %11 : i1 to vector<1x256xi1>
    %13 = vector.broadcast %12 : vector<1x256xi1> to vector<1x256xi1>
    %14 = arith.xori %10, %13 : vector<1x256xi1>
    %15 = arith.andi %14, %8 : vector<1x256xi1>
    %16 = vector.broadcast %4 : i32 to vector<1x256xi32>
    %17 = arith.addi %6, %16 : vector<1x256xi32>
    %18 = arith.select %15, %17, %6 : vector<1x256xi1>, vector<1x256xi32>
    %c1_i32_5 = arith.constant 1 : i32
    %19 = vector.broadcast %c1_i32_5 : i32 to vector<1x256xi32>
    %20 = arith.cmpi sge, %18, %19 : vector<1x256xi32>
    %c14_i32 = arith.constant 14 : i32
    %21 = vector.broadcast %c14_i32 : i32 to vector<1x256xi32>
    %22 = arith.cmpi sle, %18, %21 : vector<1x256xi32>
    %c0_6 = arith.constant 0 : index
    %c0_7 = arith.constant 0 : index
    %23 = vector.load %arg2[%c0_6, %c0_7] : memref<16x4xbf16, #tpu.memory_space<vmem>>, vector<16x4xbf16>
    %24 = arith.truncf %1 : vector<4x256xf32> to vector<4x256xbf16>
    %cst = arith.constant dense<0.000000e+00> : vector<16x256xf32>
    %25 = tpu.matmul %23, %24, %cst {dimension_numbers = #tpu.dot_dimension_numbers<[1], [0], [0], [1], [0, 0, 1, 1], [], []>} : vector<16x4xbf16>, vector<4x256xbf16>, vector<16x256xf32> -> vector<16x256xf32>
    %c0_8 = arith.constant 0 : index
    %c0_9 = arith.constant 0 : index
    %26 = vector.load %arg3[%c0_8, %c0_9] : memref<16x1xf32, #tpu.memory_space<vmem>>, vector<16x1xf32>
    %27 = vector.broadcast %26 : vector<16x1xf32> to vector<16x256xf32>
    %28 = arith.addf %25, %27 : vector<16x256xf32>
    %cst_10 = arith.constant 0.000000e+00 : f32
    %29 = vector.broadcast %cst_10 : f32 to vector<16x256xf32>
    %30 = arith.maximumf %28, %29 : vector<16x256xf32>
    %31 = vector.extract_strided_slice %30 {offsets = [0, 0], sizes = [8, 256], strides = [1, 1]} : vector<16x256xf32> to vector<8x256xf32>
    %c0_11 = arith.constant 0 : index
    %c0_12 = arith.constant 0 : index
    %c0_13 = arith.constant 0 : index
    %32 = vector.load %arg12[%c0_11, %c0_12, %c0_13] : memref<1x32x256xf32, #tpu.memory_space<vmem>>, vector<1x8x256xf32>
    %33 = vector.shape_cast %32 : vector<1x8x256xf32> to vector<8x256xf32>
    %34 = vector.shape_cast %31 : vector<8x256xf32> to vector<1x8x256xf32>
    tpu.vector_store %arg12[%c0_11, %c0_12, %c0_13], %34 {strides = array<i32>} : memref<1x32x256xf32, #tpu.memory_space<vmem>>, vector<1x8x256xf32>,
    %35 = vector.extract_strided_slice %30 {offsets = [8, 0], sizes = [4, 256], strides = [1, 1]} : vector<16x256xf32> to vector<4x256xf32>
    %36 = vector.extract_strided_slice %30 {offsets = [12, 0], sizes = [4, 256], strides = [1, 1]} : vector<16x256xf32> to vector<4x256xf32>
    %cst_14 = arith.constant 0.000000e+00 : bf16
    %37 = vector.broadcast %cst_14 : bf16 to vector<8x128xbf16>
    %c0_15 = arith.constant 0 : index
    %c0_16 = arith.constant 0 : index
    %38 = vector.load %arg13[%c0_15, %c0_16] : memref<8x512xbf16, #tpu.memory_space<vmem>>, vector<8x128xbf16>
    tpu.vector_store %arg13[%c0_15, %c0_16], %37 {strides = array<i32>} : memref<8x512xbf16, #tpu.memory_space<vmem>>, vector<8x128xbf16>,
    %cst_17 = arith.constant 0.000000e+00 : bf16
    %39 = vector.broadcast %cst_17 : bf16 to vector<8x128xbf16>
    %c0_18 = arith.constant 0 : index
    %c384 = arith.constant 384 : index
    %40 = vector.load %arg13[%c0_18, %c384] : memref<8x512xbf16, #tpu.memory_space<vmem>>, vector<8x128xbf16>
    tpu.vector_store %arg13[%c0_18, %c384], %39 {strides = array<i32>} : memref<8x512xbf16, #tpu.memory_space<vmem>>, vector<8x128xbf16>,
    %41 = arith.truncf %35 : vector<4x256xf32> to vector<4x256xbf16>
    %c0_19 = arith.constant 0 : index
    %c128 = arith.constant 128 : index
    %42 = vector.load %arg13[%c0_19, %c128] : memref<8x512xbf16, #tpu.memory_space<vmem>>, vector<4x256xbf16>
    tpu.vector_store %arg13[%c0_19, %c128], %41 {strides = array<i32>} : memref<8x512xbf16, #tpu.memory_space<vmem>>, vector<4x256xbf16>,
    %c0_20 = arith.constant 0 : index
    %c111 = arith.constant 111 : index
    %43 = vector.load %arg13[%c0_20, %c111] : memref<8x512xbf16, #tpu.memory_space<vmem>>, vector<4x256xbf16>
    %cst_21 = arith.constant 0.000000e+00 : f32
    %44 = arith.truncf %cst_21 : f32 to bf16
    %45 = vector.shape_cast %20 : vector<1x256xi1> to vector<1x256xi1>
    %46 = vector.broadcast %45 : vector<1x256xi1> to vector<4x256xi1>
    %47 = vector.broadcast %44 : bf16 to vector<4x256xbf16>
    %48 = arith.select %46, %43, %47 : vector<4x256xi1>, vector<4x256xbf16>
    %c0_22 = arith.constant 0 : index
    %c0_23 = arith.constant 0 : index
    %49 = vector.load %arg14[%c0_22, %c0_23] : memref<144x256xbf16, #tpu.memory_space<vmem>>, vector<4x256xbf16>
    tpu.vector_store %arg14[%c0_22, %c0_23], %48 {strides = array<i32>} : memref<144x256xbf16, #tpu.memory_space<vmem>>, vector<4x256xbf16>,
    %cst_24 = arith.constant 0.000000e+00 : bf16
    %50 = vector.broadcast %cst_24 : bf16 to vector<12x256xbf16>
    %c4 = arith.constant 4 : index
    %c0_25 = arith.constant 0 : index
    %51 = vector.load %arg14[%c4, %c0_25] : memref<144x256xbf16, #tpu.memory_space<vmem>>, vector<12x256xbf16>
    tpu.vector_store %arg14[%c4, %c0_25], %50 {strides = array<i32>} : memref<144x256xbf16, #tpu.memory_space<vmem>>, vector<12x256xbf16>,
    %c0_26 = arith.constant 0 : index
    %c112 = arith.constant 112 : index
    %52 = vector.load %arg13[%c0_26, %c112] : memref<8x512xbf16, #tpu.memory_space<vmem>>, vector<4x256xbf16>
    %c16 = arith.constant 16 : index
    %c0_27 = arith.constant 0 : index
    %53 = vector.load %arg14[%c16, %c0_27] : memref<144x256xbf16, #tpu.memory_space<vmem>>, vector<4x256xbf16>
    tpu.vector_store %arg14[%c16, %c0_27], %52 {strides = array<i32>} : memref<144x256xbf16, #tpu.memory_space<vmem>>, vector<4x256xbf16>,
    %cst_28 = arith.constant 0.000000e+00 : bf16
    %54 = vector.broadcast %cst_28 : bf16 to vector<12x256xbf16>
    %c20 = arith.constant 20 : index
    %c0_29 = arith.constant 0 : index
    %55 = vector.load %arg14[%c20, %c0_29] : memref<144x256xbf16, #tpu.memory_space<vmem>>, vector<12x256xbf16>
    tpu.vector_store %arg14[%c20, %c0_29], %54 {strides = array<i32>} : memref<144x256xbf16, #tpu.memory_space<vmem>>, vector<12x256xbf16>,
    %c0_30 = arith.constant 0 : index
    %c113 = arith.constant 113 : index
    %56 = vector.load %arg13[%c0_30, %c113] : memref<8x512xbf16, #tpu.memory_space<vmem>>, vector<4x256xbf16>
    %cst_31 = arith.constant 0.000000e+00 : f32
    %57 = arith.truncf %cst_31 : f32 to bf16
    %58 = vector.shape_cast %22 : vector<1x256xi1> to vector<1x256xi1>
    %59 = vector.broadcast %58 : vector<1x256xi1> to vector<4x256xi1>
    %60 = vector.broadcast %57 : bf16 to vector<4x256xbf16>
    %61 = arith.select %59, %56, %60 : vector<4x256xi1>, vector<4x256xbf16>
    %c32 = arith.constant 32 : index
    %c0_32 = arith.constant 0 : index
    %62 = vector.load %arg14[%c32, %c0_32] : memref<144x256xbf16, #tpu.memory_space<vmem>>, vector<4x256xbf16>
    tpu.vector_store %arg14[%c32, %c0_32], %61 {strides = array<i32>} : memref<144x256xbf16, #tpu.memory_space<vmem>>, vector<4x256xbf16>,
    %cst_33 = arith.constant 0.000000e+00 : bf16
    %63 = vector.broadcast %cst_33 : bf16 to vector<12x256xbf16>
    %c36 = arith.constant 36 : index
    %c0_34 = arith.constant 0 : index
    %64 = vector.load %arg14[%c36, %c0_34] : memref<144x256xbf16, #tpu.memory_space<vmem>>, vector<12x256xbf16>
    tpu.vector_store %arg14[%c36, %c0_34], %63 {strides = array<i32>} : memref<144x256xbf16, #tpu.memory_space<vmem>>, vector<12x256xbf16>,
    %c0_35 = arith.constant 0 : index
    %c127 = arith.constant 127 : index
    %65 = vector.load %arg13[%c0_35, %c127] : memref<8x512xbf16, #tpu.memory_space<vmem>>, vector<4x256xbf16>
    %cst_36 = arith.constant 0.000000e+00 : f32
    %66 = arith.truncf %cst_36 : f32 to bf16
    %67 = vector.shape_cast %20 : vector<1x256xi1> to vector<1x256xi1>
    %68 = vector.broadcast %67 : vector<1x256xi1> to vector<4x256xi1>
    %69 = vector.broadcast %66 : bf16 to vector<4x256xbf16>
    %70 = arith.select %68, %65, %69 : vector<4x256xi1>, vector<4x256xbf16>
    %c48 = arith.constant 48 : index
    %c0_37 = arith.constant 0 : index
    %71 = vector.load %arg14[%c48, %c0_37] : memref<144x256xbf16, #tpu.memory_space<vmem>>, vector<4x256xbf16>
    tpu.vector_store %arg14[%c48, %c0_37], %70 {strides = array<i32>} : memref<144x256xbf16, #tpu.memory_space<vmem>>, vector<4x256xbf16>,
    %cst_38 = arith.constant 0.000000e+00 : bf16
    %72 = vector.broadcast %cst_38 : bf16 to vector<12x256xbf16>
    %c52 = arith.constant 52 : index
    %c0_39 = arith.constant 0 : index
    %73 = vector.load %arg14[%c52, %c0_39] : memref<144x256xbf16, #tpu.memory_space<vmem>>, vector<12x256xbf16>
    tpu.vector_store %arg14[%c52, %c0_39], %72 {strides = array<i32>} : memref<144x256xbf16, #tpu.memory_space<vmem>>, vector<12x256xbf16>,
    %c0_40 = arith.constant 0 : index
    %c128_41 = arith.constant 128 : index
    %74 = vector.load %arg13[%c0_40, %c128_41] : memref<8x512xbf16, #tpu.memory_space<vmem>>, vector<4x256xbf16>
    %c64 = arith.constant 64 : index
    %c0_42 = arith.constant 0 : index
    %75 = vector.load %arg14[%c64, %c0_42] : memref<144x256xbf16, #tpu.memory_space<vmem>>, vector<4x256xbf16>
    tpu.vector_store %arg14[%c64, %c0_42], %74 {strides = array<i32>} : memref<144x256xbf16, #tpu.memory_space<vmem>>, vector<4x256xbf16>,
    %cst_43 = arith.constant 0.000000e+00 : bf16
    %76 = vector.broadcast %cst_43 : bf16 to vector<12x256xbf16>
    %c68 = arith.constant 68 : index
    %c0_44 = arith.constant 0 : index
    %77 = vector.load %arg14[%c68, %c0_44] : memref<144x256xbf16, #tpu.memory_space<vmem>>, vector<12x256xbf16>
    tpu.vector_store %arg14[%c68, %c0_44], %76 {strides = array<i32>} : memref<144x256xbf16, #tpu.memory_space<vmem>>, vector<12x256xbf16>,
    %c0_45 = arith.constant 0 : index
    %c129 = arith.constant 129 : index
    %78 = vector.load %arg13[%c0_45, %c129] : memref<8x512xbf16, #tpu.memory_space<vmem>>, vector<4x256xbf16>
    %cst_46 = arith.constant 0.000000e+00 : f32
    %79 = arith.truncf %cst_46 : f32 to bf16
    %80 = vector.shape_cast %22 : vector<1x256xi1> to vector<1x256xi1>
    %81 = vector.broadcast %80 : vector<1x256xi1> to vector<4x256xi1>
    %82 = vector.broadcast %79 : bf16 to vector<4x256xbf16>
    %83 = arith.select %81, %78, %82 : vector<4x256xi1>, vector<4x256xbf16>
    %c80 = arith.constant 80 : index
    %c0_47 = arith.constant 0 : index
    %84 = vector.load %arg14[%c80, %c0_47] : memref<144x256xbf16, #tpu.memory_space<vmem>>, vector<4x256xbf16>
    tpu.vector_store %arg14[%c80, %c0_47], %83 {strides = array<i32>} : memref<144x256xbf16, #tpu.memory_space<vmem>>, vector<4x256xbf16>,
    %cst_48 = arith.constant 0.000000e+00 : bf16
    %85 = vector.broadcast %cst_48 : bf16 to vector<12x256xbf16>
    %c84 = arith.constant 84 : index
    %c0_49 = arith.constant 0 : index
    %86 = vector.load %arg14[%c84, %c0_49] : memref<144x256xbf16, #tpu.memory_space<vmem>>, vector<12x256xbf16>
    tpu.vector_store %arg14[%c84, %c0_49], %85 {strides = array<i32>} : memref<144x256xbf16, #tpu.memory_space<vmem>>, vector<12x256xbf16>,
    %c0_50 = arith.constant 0 : index
    %c143 = arith.constant 143 : index
    %87 = vector.load %arg13[%c0_50, %c143] : memref<8x512xbf16, #tpu.memory_space<vmem>>, vector<4x256xbf16>
    %cst_51 = arith.constant 0.000000e+00 : f32
    %88 = arith.truncf %cst_51 : f32 to bf16
    %89 = vector.shape_cast %20 : vector<1x256xi1> to vector<1x256xi1>
    %90 = vector.broadcast %89 : vector<1x256xi1> to vector<4x256xi1>
    %91 = vector.broadcast %88 : bf16 to vector<4x256xbf16>
    %92 = arith.select %90, %87, %91 : vector<4x256xi1>, vector<4x256xbf16>
    %c96 = arith.constant 96 : index
    %c0_52 = arith.constant 0 : index
    %93 = vector.load %arg14[%c96, %c0_52] : memref<144x256xbf16, #tpu.memory_space<vmem>>, vector<4x256xbf16>
    tpu.vector_store %arg14[%c96, %c0_52], %92 {strides = array<i32>} : memref<144x256xbf16, #tpu.memory_space<vmem>>, vector<4x256xbf16>,
    %cst_53 = arith.constant 0.000000e+00 : bf16
    %94 = vector.broadcast %cst_53 : bf16 to vector<12x256xbf16>
    %c100 = arith.constant 100 : index
    %c0_54 = arith.constant 0 : index
    %95 = vector.load %arg14[%c100, %c0_54] : memref<144x256xbf16, #tpu.memory_space<vmem>>, vector<12x256xbf16>
    tpu.vector_store %arg14[%c100, %c0_54], %94 {strides = array<i32>} : memref<144x256xbf16, #tpu.memory_space<vmem>>, vector<12x256xbf16>,
    %c0_55 = arith.constant 0 : index
    %c144 = arith.constant 144 : index
    %96 = vector.load %arg13[%c0_55, %c144] : memref<8x512xbf16, #tpu.memory_space<vmem>>, vector<4x256xbf16>
    %c112_56 = arith.constant 112 : index
    %c0_57 = arith.constant 0 : index
    %97 = vector.load %arg14[%c112_56, %c0_57] : memref<144x256xbf16, #tpu.memory_space<vmem>>, vector<4x256xbf16>
    tpu.vector_store %arg14[%c112_56, %c0_57], %96 {strides = array<i32>} : memref<144x256xbf16, #tpu.memory_space<vmem>>, vector<4x256xbf16>,
    %cst_58 = arith.constant 0.000000e+00 : bf16
    %98 = vector.broadcast %cst_58 : bf16 to vector<12x256xbf16>
    %c116 = arith.constant 116 : index
    %c0_59 = arith.constant 0 : index
    %99 = vector.load %arg14[%c116, %c0_59] : memref<144x256xbf16, #tpu.memory_space<vmem>>, vector<12x256xbf16>
    tpu.vector_store %arg14[%c116, %c0_59], %98 {strides = array<i32>} : memref<144x256xbf16, #tpu.memory_space<vmem>>, vector<12x256xbf16>,
    %c0_60 = arith.constant 0 : index
    %c145 = arith.constant 145 : index
    %100 = vector.load %arg13[%c0_60, %c145] : memref<8x512xbf16, #tpu.memory_space<vmem>>, vector<4x256xbf16>
    %cst_61 = arith.constant 0.000000e+00 : f32
    %101 = arith.truncf %cst_61 : f32 to bf16
    %102 = vector.shape_cast %22 : vector<1x256xi1> to vector<1x256xi1>
    %103 = vector.broadcast %102 : vector<1x256xi1> to vector<4x256xi1>
    %104 = vector.broadcast %101 : bf16 to vector<4x256xbf16>
    %105 = arith.select %103, %100, %104 : vector<4x256xi1>, vector<4x256xbf16>
    %c128_62 = arith.constant 128 : index
    %c0_63 = arith.constant 0 : index
    %106 = vector.load %arg14[%c128_62, %c0_63] : memref<144x256xbf16, #tpu.memory_space<vmem>>, vector<4x256xbf16>
    tpu.vector_store %arg14[%c128_62, %c0_63], %105 {strides = array<i32>} : memref<144x256xbf16, #tpu.memory_space<vmem>>, vector<4x256xbf16>,
    %cst_64 = arith.constant 0.000000e+00 : bf16
    %107 = vector.broadcast %cst_64 : bf16 to vector<12x256xbf16>
    %c132 = arith.constant 132 : index
    %c0_65 = arith.constant 0 : index
    %108 = vector.load %arg14[%c132, %c0_65] : memref<144x256xbf16, #tpu.memory_space<vmem>>, vector<12x256xbf16>
    tpu.vector_store %arg14[%c132, %c0_65], %107 {strides = array<i32>} : memref<144x256xbf16, #tpu.memory_space<vmem>>, vector<12x256xbf16>,
    %c0_66 = arith.constant 0 : index
    %c0_67 = arith.constant 0 : index
    %109 = vector.load %arg4[%c0_66, %c0_67] : memref<8x144xbf16, #tpu.memory_space<vmem>>, vector<8x144xbf16>
    %c0_68 = arith.constant 0 : index
    %c0_69 = arith.constant 0 : index
    %110 = vector.load %arg14[%c0_68, %c0_69] : memref<144x256xbf16, #tpu.memory_space<vmem>>, vector<144x256xbf16>
    %cst_70 = arith.constant dense<0.000000e+00> : vector<8x256xf32>
    %111 = tpu.matmul %109, %110, %cst_70 {dimension_numbers = #tpu.dot_dimension_numbers<[1], [0], [0], [1], [0, 0, 1, 1], [], []>} : vector<8x144xbf16>, vector<144x256xbf16>, vector<8x256xf32> -> vector<8x256xf32>
    %c0_71 = arith.constant 0 : index
    %c0_72 = arith.constant 0 : index
    %112 = vector.load %arg5[%c0_71, %c0_72] : memref<8x1xf32, #tpu.memory_space<vmem>>, vector<8x1xf32>
    %113 = vector.broadcast %112 : vector<8x1xf32> to vector<8x256xf32>
    %114 = arith.addf %111, %113 : vector<8x256xf32>
    %cst_73 = arith.constant 0.000000e+00 : f32
    %115 = vector.broadcast %cst_73 : f32 to vector<8x256xf32>
    %116 = arith.maximumf %114, %115 : vector<8x256xf32>
    %c0_74 = arith.constant 0 : index
    %c8 = arith.constant 8 : index
    %c0_75 = arith.constant 0 : index
    %117 = vector.load %arg12[%c0_74, %c8, %c0_75] : memref<1x32x256xf32, #tpu.memory_space<vmem>>, vector<1x8x256xf32>
    %118 = vector.shape_cast %117 : vector<1x8x256xf32> to vector<8x256xf32>
    %119 = vector.shape_cast %116 : vector<8x256xf32> to vector<1x8x256xf32>
    tpu.vector_store %arg12[%c0_74, %c8, %c0_75], %119 {strides = array<i32>} : memref<1x32x256xf32, #tpu.memory_space<vmem>>, vector<1x8x256xf32>,
    %120 = arith.truncf %36 : vector<4x256xf32> to vector<4x256xbf16>
    %c0_76 = arith.constant 0 : index
    %c128_77 = arith.constant 128 : index
    %121 = vector.load %arg13[%c0_76, %c128_77] : memref<8x512xbf16, #tpu.memory_space<vmem>>, vector<4x256xbf16>
    tpu.vector_store %arg13[%c0_76, %c128_77], %120 {strides = array<i32>} : memref<8x512xbf16, #tpu.memory_space<vmem>>, vector<4x256xbf16>,
    %c0_78 = arith.constant 0 : index
    %c111_79 = arith.constant 111 : index
    %122 = vector.load %arg13[%c0_78, %c111_79] : memref<8x512xbf16, #tpu.memory_space<vmem>>, vector<4x256xbf16>
    %cst_80 = arith.constant 0.000000e+00 : f32
    %123 = arith.truncf %cst_80 : f32 to bf16
    %124 = vector.shape_cast %20 : vector<1x256xi1> to vector<1x256xi1>
    %125 = vector.broadcast %124 : vector<1x256xi1> to vector<4x256xi1>
    %126 = vector.broadcast %123 : bf16 to vector<4x256xbf16>
    %127 = arith.select %125, %122, %126 : vector<4x256xi1>, vector<4x256xbf16>
    %c0_81 = arith.constant 0 : index
    %c0_82 = arith.constant 0 : index
    %128 = vector.load %arg14[%c0_81, %c0_82] : memref<144x256xbf16, #tpu.memory_space<vmem>>, vector<4x256xbf16>
    tpu.vector_store %arg14[%c0_81, %c0_82], %127 {strides = array<i32>} : memref<144x256xbf16, #tpu.memory_space<vmem>>, vector<4x256xbf16>,
    %cst_83 = arith.constant 0.000000e+00 : bf16
    %129 = vector.broadcast %cst_83 : bf16 to vector<12x256xbf16>
    %c4_84 = arith.constant 4 : index
    %c0_85 = arith.constant 0 : index
    %130 = vector.load %arg14[%c4_84, %c0_85] : memref<144x256xbf16, #tpu.memory_space<vmem>>, vector<12x256xbf16>
    tpu.vector_store %arg14[%c4_84, %c0_85], %129 {strides = array<i32>} : memref<144x256xbf16, #tpu.memory_space<vmem>>, vector<12x256xbf16>,
    %c0_86 = arith.constant 0 : index
    %c112_87 = arith.constant 112 : index
    %131 = vector.load %arg13[%c0_86, %c112_87] : memref<8x512xbf16, #tpu.memory_space<vmem>>, vector<4x256xbf16>
    %c16_88 = arith.constant 16 : index
    %c0_89 = arith.constant 0 : index
    %132 = vector.load %arg14[%c16_88, %c0_89] : memref<144x256xbf16, #tpu.memory_space<vmem>>, vector<4x256xbf16>
    tpu.vector_store %arg14[%c16_88, %c0_89], %131 {strides = array<i32>} : memref<144x256xbf16, #tpu.memory_space<vmem>>, vector<4x256xbf16>,
    %cst_90 = arith.constant 0.000000e+00 : bf16
    %133 = vector.broadcast %cst_90 : bf16 to vector<12x256xbf16>
    %c20_91 = arith.constant 20 : index
    %c0_92 = arith.constant 0 : index
    %134 = vector.load %arg14[%c20_91, %c0_92] : memref<144x256xbf16, #tpu.memory_space<vmem>>, vector<12x256xbf16>
    tpu.vector_store %arg14[%c20_91, %c0_92], %133 {strides = array<i32>} : memref<144x256xbf16, #tpu.memory_space<vmem>>, vector<12x256xbf16>,
    %c0_93 = arith.constant 0 : index
    %c113_94 = arith.constant 113 : index
    %135 = vector.load %arg13[%c0_93, %c113_94] : memref<8x512xbf16, #tpu.memory_space<vmem>>, vector<4x256xbf16>
    %cst_95 = arith.constant 0.000000e+00 : f32
    %136 = arith.truncf %cst_95 : f32 to bf16
    %137 = vector.shape_cast %22 : vector<1x256xi1> to vector<1x256xi1>
    %138 = vector.broadcast %137 : vector<1x256xi1> to vector<4x256xi1>
    %139 = vector.broadcast %136 : bf16 to vector<4x256xbf16>
    %140 = arith.select %138, %135, %139 : vector<4x256xi1>, vector<4x256xbf16>
    %c32_96 = arith.constant 32 : index
    %c0_97 = arith.constant 0 : index
    %141 = vector.load %arg14[%c32_96, %c0_97] : memref<144x256xbf16, #tpu.memory_space<vmem>>, vector<4x256xbf16>
    tpu.vector_store %arg14[%c32_96, %c0_97], %140 {strides = array<i32>} : memref<144x256xbf16, #tpu.memory_space<vmem>>, vector<4x256xbf16>,
    %cst_98 = arith.constant 0.000000e+00 : bf16
    %142 = vector.broadcast %cst_98 : bf16 to vector<12x256xbf16>
    %c36_99 = arith.constant 36 : index
    %c0_100 = arith.constant 0 : index
    %143 = vector.load %arg14[%c36_99, %c0_100] : memref<144x256xbf16, #tpu.memory_space<vmem>>, vector<12x256xbf16>
    tpu.vector_store %arg14[%c36_99, %c0_100], %142 {strides = array<i32>} : memref<144x256xbf16, #tpu.memory_space<vmem>>, vector<12x256xbf16>,
    %c0_101 = arith.constant 0 : index
    %c127_102 = arith.constant 127 : index
    %144 = vector.load %arg13[%c0_101, %c127_102] : memref<8x512xbf16, #tpu.memory_space<vmem>>, vector<4x256xbf16>
    %cst_103 = arith.constant 0.000000e+00 : f32
    %145 = arith.truncf %cst_103 : f32 to bf16
    %146 = vector.shape_cast %20 : vector<1x256xi1> to vector<1x256xi1>
    %147 = vector.broadcast %146 : vector<1x256xi1> to vector<4x256xi1>
    %148 = vector.broadcast %145 : bf16 to vector<4x256xbf16>
    %149 = arith.select %147, %144, %148 : vector<4x256xi1>, vector<4x256xbf16>
    %c48_104 = arith.constant 48 : index
    %c0_105 = arith.constant 0 : index
    %150 = vector.load %arg14[%c48_104, %c0_105] : memref<144x256xbf16, #tpu.memory_space<vmem>>, vector<4x256xbf16>
    tpu.vector_store %arg14[%c48_104, %c0_105], %149 {strides = array<i32>} : memref<144x256xbf16, #tpu.memory_space<vmem>>, vector<4x256xbf16>,
    %cst_106 = arith.constant 0.000000e+00 : bf16
    %151 = vector.broadcast %cst_106 : bf16 to vector<12x256xbf16>
    %c52_107 = arith.constant 52 : index
    %c0_108 = arith.constant 0 : index
    %152 = vector.load %arg14[%c52_107, %c0_108] : memref<144x256xbf16, #tpu.memory_space<vmem>>, vector<12x256xbf16>
    tpu.vector_store %arg14[%c52_107, %c0_108], %151 {strides = array<i32>} : memref<144x256xbf16, #tpu.memory_space<vmem>>, vector<12x256xbf16>,
    %c0_109 = arith.constant 0 : index
    %c128_110 = arith.constant 128 : index
    %153 = vector.load %arg13[%c0_109, %c128_110] : memref<8x512xbf16, #tpu.memory_space<vmem>>, vector<4x256xbf16>
    %c64_111 = arith.constant 64 : index
    %c0_112 = arith.constant 0 : index
    %154 = vector.load %arg14[%c64_111, %c0_112] : memref<144x256xbf16, #tpu.memory_space<vmem>>, vector<4x256xbf16>
    tpu.vector_store %arg14[%c64_111, %c0_112], %153 {strides = array<i32>} : memref<144x256xbf16, #tpu.memory_space<vmem>>, vector<4x256xbf16>,
    %cst_113 = arith.constant 0.000000e+00 : bf16
    %155 = vector.broadcast %cst_113 : bf16 to vector<12x256xbf16>
    %c68_114 = arith.constant 68 : index
    %c0_115 = arith.constant 0 : index
    %156 = vector.load %arg14[%c68_114, %c0_115] : memref<144x256xbf16, #tpu.memory_space<vmem>>, vector<12x256xbf16>
    tpu.vector_store %arg14[%c68_114, %c0_115], %155 {strides = array<i32>} : memref<144x256xbf16, #tpu.memory_space<vmem>>, vector<12x256xbf16>,
    %c0_116 = arith.constant 0 : index
    %c129_117 = arith.constant 129 : index
    %157 = vector.load %arg13[%c0_116, %c129_117] : memref<8x512xbf16, #tpu.memory_space<vmem>>, vector<4x256xbf16>
    %cst_118 = arith.constant 0.000000e+00 : f32
    %158 = arith.truncf %cst_118 : f32 to bf16
    %159 = vector.shape_cast %22 : vector<1x256xi1> to vector<1x256xi1>
    %160 = vector.broadcast %159 : vector<1x256xi1> to vector<4x256xi1>
    %161 = vector.broadcast %158 : bf16 to vector<4x256xbf16>
    %162 = arith.select %160, %157, %161 : vector<4x256xi1>, vector<4x256xbf16>
    %c80_119 = arith.constant 80 : index
    %c0_120 = arith.constant 0 : index
    %163 = vector.load %arg14[%c80_119, %c0_120] : memref<144x256xbf16, #tpu.memory_space<vmem>>, vector<4x256xbf16>
    tpu.vector_store %arg14[%c80_119, %c0_120], %162 {strides = array<i32>} : memref<144x256xbf16, #tpu.memory_space<vmem>>, vector<4x256xbf16>,
    %cst_121 = arith.constant 0.000000e+00 : bf16
    %164 = vector.broadcast %cst_121 : bf16 to vector<12x256xbf16>
    %c84_122 = arith.constant 84 : index
    %c0_123 = arith.constant 0 : index
    %165 = vector.load %arg14[%c84_122, %c0_123] : memref<144x256xbf16, #tpu.memory_space<vmem>>, vector<12x256xbf16>
    tpu.vector_store %arg14[%c84_122, %c0_123], %164 {strides = array<i32>} : memref<144x256xbf16, #tpu.memory_space<vmem>>, vector<12x256xbf16>,
    %c0_124 = arith.constant 0 : index
    %c143_125 = arith.constant 143 : index
    %166 = vector.load %arg13[%c0_124, %c143_125] : memref<8x512xbf16, #tpu.memory_space<vmem>>, vector<4x256xbf16>
    %cst_126 = arith.constant 0.000000e+00 : f32
    %167 = arith.truncf %cst_126 : f32 to bf16
    %168 = vector.shape_cast %20 : vector<1x256xi1> to vector<1x256xi1>
    %169 = vector.broadcast %168 : vector<1x256xi1> to vector<4x256xi1>
    %170 = vector.broadcast %167 : bf16 to vector<4x256xbf16>
    %171 = arith.select %169, %166, %170 : vector<4x256xi1>, vector<4x256xbf16>
    %c96_127 = arith.constant 96 : index
    %c0_128 = arith.constant 0 : index
    %172 = vector.load %arg14[%c96_127, %c0_128] : memref<144x256xbf16, #tpu.memory_space<vmem>>, vector<4x256xbf16>
    tpu.vector_store %arg14[%c96_127, %c0_128], %171 {strides = array<i32>} : memref<144x256xbf16, #tpu.memory_space<vmem>>, vector<4x256xbf16>,
    %cst_129 = arith.constant 0.000000e+00 : bf16
    %173 = vector.broadcast %cst_129 : bf16 to vector<12x256xbf16>
    %c100_130 = arith.constant 100 : index
    %c0_131 = arith.constant 0 : index
    %174 = vector.load %arg14[%c100_130, %c0_131] : memref<144x256xbf16, #tpu.memory_space<vmem>>, vector<12x256xbf16>
    tpu.vector_store %arg14[%c100_130, %c0_131], %173 {strides = array<i32>} : memref<144x256xbf16, #tpu.memory_space<vmem>>, vector<12x256xbf16>,
    %c0_132 = arith.constant 0 : index
    %c144_133 = arith.constant 144 : index
    %175 = vector.load %arg13[%c0_132, %c144_133] : memref<8x512xbf16, #tpu.memory_space<vmem>>, vector<4x256xbf16>
    %c112_134 = arith.constant 112 : index
    %c0_135 = arith.constant 0 : index
    %176 = vector.load %arg14[%c112_134, %c0_135] : memref<144x256xbf16, #tpu.memory_space<vmem>>, vector<4x256xbf16>
    tpu.vector_store %arg14[%c112_134, %c0_135], %175 {strides = array<i32>} : memref<144x256xbf16, #tpu.memory_space<vmem>>, vector<4x256xbf16>,
    %cst_136 = arith.constant 0.000000e+00 : bf16
    %177 = vector.broadcast %cst_136 : bf16 to vector<12x256xbf16>
    %c116_137 = arith.constant 116 : index
    %c0_138 = arith.constant 0 : index
    %178 = vector.load %arg14[%c116_137, %c0_138] : memref<144x256xbf16, #tpu.memory_space<vmem>>, vector<12x256xbf16>
    tpu.vector_store %arg14[%c116_137, %c0_138], %177 {strides = array<i32>} : memref<144x256xbf16, #tpu.memory_space<vmem>>, vector<12x256xbf16>,
    %c0_139 = arith.constant 0 : index
    %c145_140 = arith.constant 145 : index
    %179 = vector.load %arg13[%c0_139, %c145_140] : memref<8x512xbf16, #tpu.memory_space<vmem>>, vector<4x256xbf16>
    %cst_141 = arith.constant 0.000000e+00 : f32
    %180 = arith.truncf %cst_141 : f32 to bf16
    %181 = vector.shape_cast %22 : vector<1x256xi1> to vector<1x256xi1>
    %182 = vector.broadcast %181 : vector<1x256xi1> to vector<4x256xi1>
    %183 = vector.broadcast %180 : bf16 to vector<4x256xbf16>
    %184 = arith.select %182, %179, %183 : vector<4x256xi1>, vector<4x256xbf16>
    %c128_142 = arith.constant 128 : index
    %c0_143 = arith.constant 0 : index
    %185 = vector.load %arg14[%c128_142, %c0_143] : memref<144x256xbf16, #tpu.memory_space<vmem>>, vector<4x256xbf16>
    tpu.vector_store %arg14[%c128_142, %c0_143], %184 {strides = array<i32>} : memref<144x256xbf16, #tpu.memory_space<vmem>>, vector<4x256xbf16>,
    %cst_144 = arith.constant 0.000000e+00 : bf16
    %186 = vector.broadcast %cst_144 : bf16 to vector<12x256xbf16>
    %c132_145 = arith.constant 132 : index
    %c0_146 = arith.constant 0 : index
    %187 = vector.load %arg14[%c132_145, %c0_146] : memref<144x256xbf16, #tpu.memory_space<vmem>>, vector<12x256xbf16>
    tpu.vector_store %arg14[%c132_145, %c0_146], %186 {strides = array<i32>} : memref<144x256xbf16, #tpu.memory_space<vmem>>, vector<12x256xbf16>,
    %c0_147 = arith.constant 0 : index
    %c0_148 = arith.constant 0 : index
    %188 = vector.load %arg6[%c0_147, %c0_148] : memref<8x144xbf16, #tpu.memory_space<vmem>>, vector<8x144xbf16>
    %c0_149 = arith.constant 0 : index
    %c0_150 = arith.constant 0 : index
    %189 = vector.load %arg14[%c0_149, %c0_150] : memref<144x256xbf16, #tpu.memory_space<vmem>>, vector<144x256xbf16>
    %cst_151 = arith.constant dense<0.000000e+00> : vector<8x256xf32>
    %190 = tpu.matmul %188, %189, %cst_151 {dimension_numbers = #tpu.dot_dimension_numbers<[1], [0], [0], [1], [0, 0, 1, 1], [], []>} : vector<8x144xbf16>, vector<144x256xbf16>, vector<8x256xf32> -> vector<8x256xf32>
    %c0_152 = arith.constant 0 : index
    %c0_153 = arith.constant 0 : index
    %191 = vector.load %arg7[%c0_152, %c0_153] : memref<8x1xf32, #tpu.memory_space<vmem>>, vector<8x1xf32>
    %192 = vector.broadcast %191 : vector<8x1xf32> to vector<8x256xf32>
    %193 = arith.addf %190, %192 : vector<8x256xf32>
    %cst_154 = arith.constant 0.000000e+00 : f32
    %194 = vector.broadcast %cst_154 : f32 to vector<8x256xf32>
    %195 = arith.maximumf %193, %194 : vector<8x256xf32>
    %196 = arith.truncf %195 : vector<8x256xf32> to vector<8x256xbf16>
    %c0_155 = arith.constant 0 : index
    %c128_156 = arith.constant 128 : index
    %197 = vector.load %arg13[%c0_155, %c128_156] : memref<8x512xbf16, #tpu.memory_space<vmem>>, vector<8x256xbf16>
    tpu.vector_store %arg13[%c0_155, %c128_156], %196 {strides = array<i32>} : memref<8x512xbf16, #tpu.memory_space<vmem>>, vector<8x256xbf16>,
    %c0_157 = arith.constant 0 : index
    %c111_158 = arith.constant 111 : index
    %198 = vector.load %arg13[%c0_157, %c111_158] : memref<8x512xbf16, #tpu.memory_space<vmem>>, vector<8x256xbf16>
    %cst_159 = arith.constant 0.000000e+00 : f32
    %199 = arith.truncf %cst_159 : f32 to bf16
    %200 = vector.shape_cast %20 : vector<1x256xi1> to vector<1x256xi1>
    %201 = vector.broadcast %200 : vector<1x256xi1> to vector<8x256xi1>
    %202 = vector.broadcast %199 : bf16 to vector<8x256xbf16>
    %203 = arith.select %201, %198, %202 : vector<8x256xi1>, vector<8x256xbf16>
    %c0_160 = arith.constant 0 : index
    %c0_161 = arith.constant 0 : index
    %204 = vector.load %arg14[%c0_160, %c0_161] : memref<144x256xbf16, #tpu.memory_space<vmem>>, vector<8x256xbf16>
    tpu.vector_store %arg14[%c0_160, %c0_161], %203 {strides = array<i32>} : memref<144x256xbf16, #tpu.memory_space<vmem>>, vector<8x256xbf16>,
    %cst_162 = arith.constant 0.000000e+00 : bf16
    %205 = vector.broadcast %cst_162 : bf16 to vector<8x256xbf16>
    %c8_163 = arith.constant 8 : index
    %c0_164 = arith.constant 0 : index
    %206 = vector.load %arg14[%c8_163, %c0_164] : memref<144x256xbf16, #tpu.memory_space<vmem>>, vector<8x256xbf16>
    tpu.vector_store %arg14[%c8_163, %c0_164], %205 {strides = array<i32>} : memref<144x256xbf16, #tpu.memory_space<vmem>>, vector<8x256xbf16>,
    %c0_165 = arith.constant 0 : index
    %c112_166 = arith.constant 112 : index
    %207 = vector.load %arg13[%c0_165, %c112_166] : memref<8x512xbf16, #tpu.memory_space<vmem>>, vector<8x256xbf16>
    %c16_167 = arith.constant 16 : index
    %c0_168 = arith.constant 0 : index
    %208 = vector.load %arg14[%c16_167, %c0_168] : memref<144x256xbf16, #tpu.memory_space<vmem>>, vector<8x256xbf16>
    tpu.vector_store %arg14[%c16_167, %c0_168], %207 {strides = array<i32>} : memref<144x256xbf16, #tpu.memory_space<vmem>>, vector<8x256xbf16>,
    %cst_169 = arith.constant 0.000000e+00 : bf16
    %209 = vector.broadcast %cst_169 : bf16 to vector<8x256xbf16>
    %c24 = arith.constant 24 : index
    %c0_170 = arith.constant 0 : index
    %210 = vector.load %arg14[%c24, %c0_170] : memref<144x256xbf16, #tpu.memory_space<vmem>>, vector<8x256xbf16>
    tpu.vector_store %arg14[%c24, %c0_170], %209 {strides = array<i32>} : memref<144x256xbf16, #tpu.memory_space<vmem>>, vector<8x256xbf16>,
    %c0_171 = arith.constant 0 : index
    %c113_172 = arith.constant 113 : index
    %211 = vector.load %arg13[%c0_171, %c113_172] : memref<8x512xbf16, #tpu.memory_space<vmem>>, vector<8x256xbf16>
    %cst_173 = arith.constant 0.000000e+00 : f32
    %212 = arith.truncf %cst_173 : f32 to bf16
    %213 = vector.shape_cast %22 : vector<1x256xi1> to vector<1x256xi1>
    %214 = vector.broadcast %213 : vector<1x256xi1> to vector<8x256xi1>
    %215 = vector.broadcast %212 : bf16 to vector<8x256xbf16>
    %216 = arith.select %214, %211, %215 : vector<8x256xi1>, vector<8x256xbf16>
    %c32_174 = arith.constant 32 : index
    %c0_175 = arith.constant 0 : index
    %217 = vector.load %arg14[%c32_174, %c0_175] : memref<144x256xbf16, #tpu.memory_space<vmem>>, vector<8x256xbf16>
    tpu.vector_store %arg14[%c32_174, %c0_175], %216 {strides = array<i32>} : memref<144x256xbf16, #tpu.memory_space<vmem>>, vector<8x256xbf16>,
    %cst_176 = arith.constant 0.000000e+00 : bf16
    %218 = vector.broadcast %cst_176 : bf16 to vector<8x256xbf16>
    %c40 = arith.constant 40 : index
    %c0_177 = arith.constant 0 : index
    %219 = vector.load %arg14[%c40, %c0_177] : memref<144x256xbf16, #tpu.memory_space<vmem>>, vector<8x256xbf16>
    tpu.vector_store %arg14[%c40, %c0_177], %218 {strides = array<i32>} : memref<144x256xbf16, #tpu.memory_space<vmem>>, vector<8x256xbf16>,
    %c0_178 = arith.constant 0 : index
    %c127_179 = arith.constant 127 : index
    %220 = vector.load %arg13[%c0_178, %c127_179] : memref<8x512xbf16, #tpu.memory_space<vmem>>, vector<8x256xbf16>
    %cst_180 = arith.constant 0.000000e+00 : f32
    %221 = arith.truncf %cst_180 : f32 to bf16
    %222 = vector.shape_cast %20 : vector<1x256xi1> to vector<1x256xi1>
    %223 = vector.broadcast %222 : vector<1x256xi1> to vector<8x256xi1>
    %224 = vector.broadcast %221 : bf16 to vector<8x256xbf16>
    %225 = arith.select %223, %220, %224 : vector<8x256xi1>, vector<8x256xbf16>
    %c48_181 = arith.constant 48 : index
    %c0_182 = arith.constant 0 : index
    %226 = vector.load %arg14[%c48_181, %c0_182] : memref<144x256xbf16, #tpu.memory_space<vmem>>, vector<8x256xbf16>
    tpu.vector_store %arg14[%c48_181, %c0_182], %225 {strides = array<i32>} : memref<144x256xbf16, #tpu.memory_space<vmem>>, vector<8x256xbf16>,
    %cst_183 = arith.constant 0.000000e+00 : bf16
    %227 = vector.broadcast %cst_183 : bf16 to vector<8x256xbf16>
    %c56 = arith.constant 56 : index
    %c0_184 = arith.constant 0 : index
    %228 = vector.load %arg14[%c56, %c0_184] : memref<144x256xbf16, #tpu.memory_space<vmem>>, vector<8x256xbf16>
    tpu.vector_store %arg14[%c56, %c0_184], %227 {strides = array<i32>} : memref<144x256xbf16, #tpu.memory_space<vmem>>, vector<8x256xbf16>,
    %c0_185 = arith.constant 0 : index
    %c128_186 = arith.constant 128 : index
    %229 = vector.load %arg13[%c0_185, %c128_186] : memref<8x512xbf16, #tpu.memory_space<vmem>>, vector<8x256xbf16>
    %c64_187 = arith.constant 64 : index
    %c0_188 = arith.constant 0 : index
    %230 = vector.load %arg14[%c64_187, %c0_188] : memref<144x256xbf16, #tpu.memory_space<vmem>>, vector<8x256xbf16>
    tpu.vector_store %arg14[%c64_187, %c0_188], %229 {strides = array<i32>} : memref<144x256xbf16, #tpu.memory_space<vmem>>, vector<8x256xbf16>,
    %cst_189 = arith.constant 0.000000e+00 : bf16
    %231 = vector.broadcast %cst_189 : bf16 to vector<8x256xbf16>
    %c72 = arith.constant 72 : index
    %c0_190 = arith.constant 0 : index
    %232 = vector.load %arg14[%c72, %c0_190] : memref<144x256xbf16, #tpu.memory_space<vmem>>, vector<8x256xbf16>
    tpu.vector_store %arg14[%c72, %c0_190], %231 {strides = array<i32>} : memref<144x256xbf16, #tpu.memory_space<vmem>>, vector<8x256xbf16>,
    %c0_191 = arith.constant 0 : index
    %c129_192 = arith.constant 129 : index
    %233 = vector.load %arg13[%c0_191, %c129_192] : memref<8x512xbf16, #tpu.memory_space<vmem>>, vector<8x256xbf16>
    %cst_193 = arith.constant 0.000000e+00 : f32
    %234 = arith.truncf %cst_193 : f32 to bf16
    %235 = vector.shape_cast %22 : vector<1x256xi1> to vector<1x256xi1>
    %236 = vector.broadcast %235 : vector<1x256xi1> to vector<8x256xi1>
    %237 = vector.broadcast %234 : bf16 to vector<8x256xbf16>
    %238 = arith.select %236, %233, %237 : vector<8x256xi1>, vector<8x256xbf16>
    %c80_194 = arith.constant 80 : index
    %c0_195 = arith.constant 0 : index
    %239 = vector.load %arg14[%c80_194, %c0_195] : memref<144x256xbf16, #tpu.memory_space<vmem>>, vector<8x256xbf16>
    tpu.vector_store %arg14[%c80_194, %c0_195], %238 {strides = array<i32>} : memref<144x256xbf16, #tpu.memory_space<vmem>>, vector<8x256xbf16>,
    %cst_196 = arith.constant 0.000000e+00 : bf16
    %240 = vector.broadcast %cst_196 : bf16 to vector<8x256xbf16>
    %c88 = arith.constant 88 : index
    %c0_197 = arith.constant 0 : index
    %241 = vector.load %arg14[%c88, %c0_197] : memref<144x256xbf16, #tpu.memory_space<vmem>>, vector<8x256xbf16>
    tpu.vector_store %arg14[%c88, %c0_197], %240 {strides = array<i32>} : memref<144x256xbf16, #tpu.memory_space<vmem>>, vector<8x256xbf16>,
    %c0_198 = arith.constant 0 : index
    %c143_199 = arith.constant 143 : index
    %242 = vector.load %arg13[%c0_198, %c143_199] : memref<8x512xbf16, #tpu.memory_space<vmem>>, vector<8x256xbf16>
    %cst_200 = arith.constant 0.000000e+00 : f32
    %243 = arith.truncf %cst_200 : f32 to bf16
    %244 = vector.shape_cast %20 : vector<1x256xi1> to vector<1x256xi1>
    %245 = vector.broadcast %244 : vector<1x256xi1> to vector<8x256xi1>
    %246 = vector.broadcast %243 : bf16 to vector<8x256xbf16>
    %247 = arith.select %245, %242, %246 : vector<8x256xi1>, vector<8x256xbf16>
    %c96_201 = arith.constant 96 : index
    %c0_202 = arith.constant 0 : index
    %248 = vector.load %arg14[%c96_201, %c0_202] : memref<144x256xbf16, #tpu.memory_space<vmem>>, vector<8x256xbf16>
    tpu.vector_store %arg14[%c96_201, %c0_202], %247 {strides = array<i32>} : memref<144x256xbf16, #tpu.memory_space<vmem>>, vector<8x256xbf16>,
    %cst_203 = arith.constant 0.000000e+00 : bf16
    %249 = vector.broadcast %cst_203 : bf16 to vector<8x256xbf16>
    %c104 = arith.constant 104 : index
    %c0_204 = arith.constant 0 : index
    %250 = vector.load %arg14[%c104, %c0_204] : memref<144x256xbf16, #tpu.memory_space<vmem>>, vector<8x256xbf16>
    tpu.vector_store %arg14[%c104, %c0_204], %249 {strides = array<i32>} : memref<144x256xbf16, #tpu.memory_space<vmem>>, vector<8x256xbf16>,
    %c0_205 = arith.constant 0 : index
    %c144_206 = arith.constant 144 : index
    %251 = vector.load %arg13[%c0_205, %c144_206] : memref<8x512xbf16, #tpu.memory_space<vmem>>, vector<8x256xbf16>
    %c112_207 = arith.constant 112 : index
    %c0_208 = arith.constant 0 : index
    %252 = vector.load %arg14[%c112_207, %c0_208] : memref<144x256xbf16, #tpu.memory_space<vmem>>, vector<8x256xbf16>
    tpu.vector_store %arg14[%c112_207, %c0_208], %251 {strides = array<i32>} : memref<144x256xbf16, #tpu.memory_space<vmem>>, vector<8x256xbf16>,
    %cst_209 = arith.constant 0.000000e+00 : bf16
    %253 = vector.broadcast %cst_209 : bf16 to vector<8x256xbf16>
    %c120 = arith.constant 120 : index
    %c0_210 = arith.constant 0 : index
    %254 = vector.load %arg14[%c120, %c0_210] : memref<144x256xbf16, #tpu.memory_space<vmem>>, vector<8x256xbf16>
    tpu.vector_store %arg14[%c120, %c0_210], %253 {strides = array<i32>} : memref<144x256xbf16, #tpu.memory_space<vmem>>, vector<8x256xbf16>,
    %c0_211 = arith.constant 0 : index
    %c145_212 = arith.constant 145 : index
    %255 = vector.load %arg13[%c0_211, %c145_212] : memref<8x512xbf16, #tpu.memory_space<vmem>>, vector<8x256xbf16>
    %cst_213 = arith.constant 0.000000e+00 : f32
    %256 = arith.truncf %cst_213 : f32 to bf16
    %257 = vector.shape_cast %22 : vector<1x256xi1> to vector<1x256xi1>
    %258 = vector.broadcast %257 : vector<1x256xi1> to vector<8x256xi1>
    %259 = vector.broadcast %256 : bf16 to vector<8x256xbf16>
    %260 = arith.select %258, %255, %259 : vector<8x256xi1>, vector<8x256xbf16>
    %c128_214 = arith.constant 128 : index
    %c0_215 = arith.constant 0 : index
    %261 = vector.load %arg14[%c128_214, %c0_215] : memref<144x256xbf16, #tpu.memory_space<vmem>>, vector<8x256xbf16>
    tpu.vector_store %arg14[%c128_214, %c0_215], %260 {strides = array<i32>} : memref<144x256xbf16, #tpu.memory_space<vmem>>, vector<8x256xbf16>,
    %cst_216 = arith.constant 0.000000e+00 : bf16
    %262 = vector.broadcast %cst_216 : bf16 to vector<8x256xbf16>
    %c136 = arith.constant 136 : index
    %c0_217 = arith.constant 0 : index
    %263 = vector.load %arg14[%c136, %c0_217] : memref<144x256xbf16, #tpu.memory_space<vmem>>, vector<8x256xbf16>
    tpu.vector_store %arg14[%c136, %c0_217], %262 {strides = array<i32>} : memref<144x256xbf16, #tpu.memory_space<vmem>>, vector<8x256xbf16>,
    %c0_218 = arith.constant 0 : index
    %c0_219 = arith.constant 0 : index
    %264 = vector.load %arg8[%c0_218, %c0_219] : memref<8x144xbf16, #tpu.memory_space<vmem>>, vector<8x144xbf16>
    %c0_220 = arith.constant 0 : index
    %c0_221 = arith.constant 0 : index
    %265 = vector.load %arg14[%c0_220, %c0_221] : memref<144x256xbf16, #tpu.memory_space<vmem>>, vector<144x256xbf16>
    %cst_222 = arith.constant dense<0.000000e+00> : vector<8x256xf32>
    %266 = tpu.matmul %264, %265, %cst_222 {dimension_numbers = #tpu.dot_dimension_numbers<[1], [0], [0], [1], [0, 0, 1, 1], [], []>} : vector<8x144xbf16>, vector<144x256xbf16>, vector<8x256xf32> -> vector<8x256xf32>
    %c0_223 = arith.constant 0 : index
    %c0_224 = arith.constant 0 : index
    %267 = vector.load %arg9[%c0_223, %c0_224] : memref<8x1xf32, #tpu.memory_space<vmem>>, vector<8x1xf32>
    %268 = vector.broadcast %267 : vector<8x1xf32> to vector<8x256xf32>
    %269 = arith.addf %266, %268 : vector<8x256xf32>
    %cst_225 = arith.constant 0.000000e+00 : f32
    %270 = vector.broadcast %cst_225 : f32 to vector<8x256xf32>
    %271 = arith.maximumf %269, %270 : vector<8x256xf32>
    %c0_226 = arith.constant 0 : index
    %c16_227 = arith.constant 16 : index
    %c0_228 = arith.constant 0 : index
    %272 = vector.load %arg12[%c0_226, %c16_227, %c0_228] : memref<1x32x256xf32, #tpu.memory_space<vmem>>, vector<1x8x256xf32>
    %273 = vector.shape_cast %272 : vector<1x8x256xf32> to vector<8x256xf32>
    %274 = vector.shape_cast %271 : vector<8x256xf32> to vector<1x8x256xf32>
    tpu.vector_store %arg12[%c0_226, %c16_227, %c0_228], %274 {strides = array<i32>} : memref<1x32x256xf32, #tpu.memory_space<vmem>>, vector<1x8x256xf32>,
    %cst_229 = arith.constant -3.004060e+38 : bf16
    %275 = vector.broadcast %cst_229 : bf16 to vector<4x128xbf16>
    %c0_230 = arith.constant 0 : index
    %c0_231 = arith.constant 0 : index
    %276 = vector.load %arg13[%c0_230, %c0_231] : memref<8x512xbf16, #tpu.memory_space<vmem>>, vector<4x128xbf16>
    tpu.vector_store %arg13[%c0_230, %c0_231], %275 {strides = array<i32>} : memref<8x512xbf16, #tpu.memory_space<vmem>>, vector<4x128xbf16>,
    %cst_232 = arith.constant -3.004060e+38 : bf16
    %277 = vector.broadcast %cst_232 : bf16 to vector<4x128xbf16>
    %c0_233 = arith.constant 0 : index
    %c384_234 = arith.constant 384 : index
    %278 = vector.load %arg13[%c0_233, %c384_234] : memref<8x512xbf16, #tpu.memory_space<vmem>>, vector<4x128xbf16>
    tpu.vector_store %arg13[%c0_233, %c384_234], %277 {strides = array<i32>} : memref<8x512xbf16, #tpu.memory_space<vmem>>, vector<4x128xbf16>,
    %279 = arith.truncf %1 : vector<4x256xf32> to vector<4x256xbf16>
    %c0_235 = arith.constant 0 : index
    %c128_236 = arith.constant 128 : index
    %280 = vector.load %arg13[%c0_235, %c128_236] : memref<8x512xbf16, #tpu.memory_space<vmem>>, vector<4x256xbf16>
    tpu.vector_store %arg13[%c0_235, %c128_236], %279 {strides = array<i32>} : memref<8x512xbf16, #tpu.memory_space<vmem>>, vector<4x256xbf16>,
    %c0_237 = arith.constant 0 : index
    %c112_238 = arith.constant 112 : index
    %281 = vector.load %arg13[%c0_237, %c112_238] : memref<8x512xbf16, #tpu.memory_space<vmem>>, vector<4x256xbf16>
    %c0_239 = arith.constant 0 : index
    %c128_240 = arith.constant 128 : index
    %282 = vector.load %arg13[%c0_239, %c128_240] : memref<8x512xbf16, #tpu.memory_space<vmem>>, vector<4x256xbf16>
    %283 = arith.maximumf %281, %282 : vector<4x256xbf16>
    %c0_241 = arith.constant 0 : index
    %c144_242 = arith.constant 144 : index
    %284 = vector.load %arg13[%c0_241, %c144_242] : memref<8x512xbf16, #tpu.memory_space<vmem>>, vector<4x256xbf16>
    %285 = arith.maximumf %283, %284 : vector<4x256xbf16>
    %c0_243 = arith.constant 0 : index
    %c128_244 = arith.constant 128 : index
    %286 = vector.load %arg13[%c0_243, %c128_244] : memref<8x512xbf16, #tpu.memory_space<vmem>>, vector<4x256xbf16>
    tpu.vector_store %arg13[%c0_243, %c128_244], %285 {strides = array<i32>} : memref<8x512xbf16, #tpu.memory_space<vmem>>, vector<4x256xbf16>,
    %c0_245 = arith.constant 0 : index
    %c127_246 = arith.constant 127 : index
    %287 = vector.load %arg13[%c0_245, %c127_246] : memref<8x512xbf16, #tpu.memory_space<vmem>>, vector<4x256xbf16>
    %cst_247 = arith.constant -3.000000e+38 : f32
    %288 = arith.truncf %cst_247 : f32 to bf16
    %289 = vector.shape_cast %20 : vector<1x256xi1> to vector<1x256xi1>
    %290 = vector.broadcast %289 : vector<1x256xi1> to vector<4x256xi1>
    %291 = vector.broadcast %288 : bf16 to vector<4x256xbf16>
    %292 = arith.select %290, %287, %291 : vector<4x256xi1>, vector<4x256xbf16>
    %293 = arith.maximumf %292, %285 : vector<4x256xbf16>
    %c0_248 = arith.constant 0 : index
    %c129_249 = arith.constant 129 : index
    %294 = vector.load %arg13[%c0_248, %c129_249] : memref<8x512xbf16, #tpu.memory_space<vmem>>, vector<4x256xbf16>
    %cst_250 = arith.constant -3.000000e+38 : f32
    %295 = arith.truncf %cst_250 : f32 to bf16
    %296 = vector.shape_cast %22 : vector<1x256xi1> to vector<1x256xi1>
    %297 = vector.broadcast %296 : vector<1x256xi1> to vector<4x256xi1>
    %298 = vector.broadcast %295 : bf16 to vector<4x256xbf16>
    %299 = arith.select %297, %294, %298 : vector<4x256xi1>, vector<4x256xbf16>
    %300 = arith.maximumf %293, %299 : vector<4x256xbf16>
    %c0_251 = arith.constant 0 : index
    %c0_252 = arith.constant 0 : index
    %301 = vector.load %arg10[%c0_251, %c0_252] : memref<8x4xbf16, #tpu.memory_space<vmem>>, vector<8x4xbf16>
    %cst_253 = arith.constant dense<0.000000e+00> : vector<8x256xf32>
    %302 = tpu.matmul %301, %300, %cst_253 {dimension_numbers = #tpu.dot_dimension_numbers<[1], [0], [0], [1], [0, 0, 1, 1], [], []>} : vector<8x4xbf16>, vector<4x256xbf16>, vector<8x256xf32> -> vector<8x256xf32>
    %c0_254 = arith.constant 0 : index
    %c0_255 = arith.constant 0 : index
    %303 = vector.load %arg11[%c0_254, %c0_255] : memref<8x1xf32, #tpu.memory_space<vmem>>, vector<8x1xf32>
    %304 = vector.broadcast %303 : vector<8x1xf32> to vector<8x256xf32>
    %305 = arith.addf %302, %304 : vector<8x256xf32>
    %cst_256 = arith.constant 0.000000e+00 : f32
    %306 = vector.broadcast %cst_256 : f32 to vector<8x256xf32>
    %307 = arith.maximumf %305, %306 : vector<8x256xf32>
    %c0_257 = arith.constant 0 : index
    %c24_258 = arith.constant 24 : index
    %c0_259 = arith.constant 0 : index
    %308 = vector.load %arg12[%c0_257, %c24_258, %c0_259] : memref<1x32x256xf32, #tpu.memory_space<vmem>>, vector<1x8x256xf32>
    %309 = vector.shape_cast %308 : vector<1x8x256xf32> to vector<8x256xf32>
    %310 = vector.shape_cast %307 : vector<8x256xf32> to vector<1x8x256xf32>
    tpu.vector_store %arg12[%c0_257, %c24_258, %c0_259], %310 {strides = array<i32>} : memref<1x32x256xf32, #tpu.memory_space<vmem>>, vector<1x8x256xf32>,
    return
  }
  func.func @transform_0(%arg0: i32) -> (i32, i32, i32) {
    %c0_i32 = arith.constant 0 : i32
    %c0_i32_0 = arith.constant 0 : i32
    %c0_i32_1 = arith.constant 0 : i32
    return %arg0, %c0_i32, %c0_i32_0 : i32, i32, i32
  }
  func.func @transform_1(%arg0: i32) -> (i32, i32) {
    %c0_i32 = arith.constant 0 : i32
    %c0_i32_0 = arith.constant 0 : i32
    %c0_i32_1 = arith.constant 0 : i32
    return %c0_i32, %c0_i32_0 : i32, i32
  }
  func.func @transform_2(%arg0: i32) -> (i32, i32) {
    %c0_i32 = arith.constant 0 : i32
    %c0_i32_0 = arith.constant 0 : i32
    %c0_i32_1 = arith.constant 0 : i32
    return %c0_i32, %c0_i32_0 : i32, i32
  }
  func.func @transform_3(%arg0: i32) -> (i32, i32) {
    %c0_i32 = arith.constant 0 : i32
    %c0_i32_0 = arith.constant 0 : i32
    %c0_i32_1 = arith.constant 0 : i32
    return %c0_i32, %c0_i32_0 : i32, i32
  }
  func.func @transform_4(%arg0: i32) -> (i32, i32) {
    %c0_i32 = arith.constant 0 : i32
    %c0_i32_0 = arith.constant 0 : i32
    %c0_i32_1 = arith.constant 0 : i32
    return %c0_i32, %c0_i32_0 : i32, i32
  }
  func.func @transform_5(%arg0: i32) -> (i32, i32) {
    %c0_i32 = arith.constant 0 : i32
    %c0_i32_0 = arith.constant 0 : i32
    %c0_i32_1 = arith.constant 0 : i32
    return %c0_i32, %c0_i32_0 : i32, i32
  }
  func.func @transform_6(%arg0: i32) -> (i32, i32) {
    %c0_i32 = arith.constant 0 : i32
    %c0_i32_0 = arith.constant 0 : i32
    %c0_i32_1 = arith.constant 0 : i32
    return %c0_i32, %c0_i32_0 : i32, i32
  }
  func.func @transform_7(%arg0: i32) -> (i32, i32) {
    %c0_i32 = arith.constant 0 : i32
    %c0_i32_0 = arith.constant 0 : i32
    %c0_i32_1 = arith.constant 0 : i32
    return %c0_i32, %c0_i32_0 : i32, i32
  }
  func.func @transform_8(%arg0: i32) -> (i32, i32) {
    %c0_i32 = arith.constant 0 : i32
    %c0_i32_0 = arith.constant 0 : i32
    %c0_i32_1 = arith.constant 0 : i32
    return %c0_i32, %c0_i32_0 : i32, i32
  }
  func.func @transform_9(%arg0: i32) -> (i32, i32) {
    %c0_i32 = arith.constant 0 : i32
    %c0_i32_0 = arith.constant 0 : i32
    %c0_i32_1 = arith.constant 0 : i32
    return %c0_i32, %c0_i32_0 : i32, i32
  }
  func.func @transform_10(%arg0: i32) -> (i32, i32) {
    %c0_i32 = arith.constant 0 : i32
    %c0_i32_0 = arith.constant 0 : i32
    %c0_i32_1 = arith.constant 0 : i32
    return %c0_i32, %c0_i32_0 : i32, i32
  }
  func.func @transform_11(%arg0: i32) -> (i32, i32, i32) {
    %c0_i32 = arith.constant 0 : i32
    %c0_i32_0 = arith.constant 0 : i32
    %c0_i32_1 = arith.constant 0 : i32
    return %arg0, %c0_i32, %c0_i32_0 : i32, i32, i32
  }
}

</mosaic_0001>

<bundles_post_ra>
// kernel: tpu_custom_call.1
= control target key start
LH: loop header
LB: loop body
LE: loop exit
PB: predicated region body
PF: predicated region fallthrough
CT: control target
= control target key end

     0   :  { %16 = vsyncpa [#allocation5], 0  ;;  %s2711_s0 = inlined_call_operand.vmem [shape: f32[2,4,256], index: 0, kind: input, shape index: {}]   ;;  %s2712_s1 = inlined_call_operand.vmem [shape: bf16[16,4], index: 1, kind: input, shape index: {}]   ;;  %s2713_s2 = inlined_call_operand.vmem [shape: f32[16,1], index: 2, kind: input, shape index: {}]   ;;  %s2714_s3 = inlined_call_operand.vmem [shape: bf16[8,144], index: 3, kind: input, shape index: {}]   ;;  %s2715_s4 = inlined_call_operand.vmem [shape: f32[8,1], index: 4, kind: input, shape index: {}]   ;;  %s2716_s5 = inlined_call_operand.vmem [shape: bf16[8,144], index: 5, kind: input, shape index: {}]   ;;  %s2717_s6 = inlined_call_operand.vmem [shape: f32[8,1], index: 6, kind: input, shape index: {}]   ;;  %s2718_s7 = inlined_call_operand.vmem [shape: bf16[8,144], index: 7, kind: input, shape index: {}]   ;;  %s2719_s8 = inlined_call_operand.vmem [shape: f32[8,1], index: 8, kind: input, shape index: {}]   ;;  %s2720_s9 = inlined_call_operand.vmem [shape: bf16[8,4], index: 9, kind: input, shape index: {}]   ;;  %s2721_s10 = inlined_call_operand.vmem [shape: f32[8,1], index: 10, kind: input, shape index: {}]   ;;  %s2722_s11 = inlined_call_operand.hbm [shape: f32[2,32,256], index: 11, kind: output, shape index: {}]  }
   0x1   :  { %18 = vsyncpa [#allocation5 + $0x1], 0  ;;  %s2046_s17 = smov 0   ;;  %s2048_s18 = smov 0  }
   0x2   :  { %s2050_s19 = smov 0   ;;  %s2052_s20 = smov 0  }
   0x3 LB: > { %s2067_s21 = sadd.s32 4294967295, %s1970_s20   ;;  %s1719_s22 = sadd.s32 4294967294, %s1970_s20   ;;  %s1970_s20 = sphi %s2052_s20, %s2759_s20   ;;  %s1966_s19 = sphi %s2050_s19, %s2758_s19   ;;  %s1962_s18 = sphi %s2048_s18, %s2757_s18   ;;  %s1958_s17 = sphi %s2046_s17, %s2756_s17  }
   0x4   : > { %s2071_s23 = sadd.s32 1, %s1970_s20   ;;  %s267_s24 = sadd.s32 1, %s1966_s19 }
   0x5   : > { %s264_s25 = ssub.s32 %s1970_s20, %s2071_s23  ;;  %p277_p0 = scmp.ne.s32.totalorder %s1966_s19, %s1962_s18 }
   0x6   : > { %p265_p1 = scmp.eq.s32.totalorder %s264_s25, 0  ;;  %p278_p2 = scmp.eq.s32.totalorder %s2067_s21, 1 }
   0x7   : > { %p283_p3 = scmp.ne.s32.totalorder %s1962_s18, %s1958_s17  ;;  %p284_p4 = scmp.eq.s32.totalorder %s1719_s22, 1 }
   0x8   : > { %s2082_s26 = scalar_select %p265_p1, %s1966_s19, %s267_s24  }
   0x9   : > { %p2084_p5 = por %p278_p2, %p277_p0  ;;  %p2088_p6 = por %p284_p4, %p283_p3 }
   0xa   : > { %p1722_p7 = scmp.ge.s32.totalorder %s1970_s20, 1  ;;  %p340_p8 = scmp.lt.s32.totalorder %s1970_s20, 3 }
   0xc   : > { %p341_p9 = pnand %p1722_p7, %p340_p8 }
   0xd   : > { %p380_p10 = scmp.lt.s32.totalorder (!%p341_p9), %s2067_s21, 1  ;;  %v390_v0 = vlaneseq (!%p341_p9)  ;;  %v1972_v1 = vmov (!%p341_p9), 0   ;;  %v429_v2 = vld [vmem:[%s2713_s2 + $0x8] sm:$0xff] (!%p341_p9)  ;;  %vm2724_vm0 = vcmask (!%p341_p9), 1041408   ;;  %v1890_v14 = vld [vmem:[%s2712_s1] sm:$0xff] (!%p341_p9)   ;;  %s2726_s25 = smov (!%p341_p9), 113  }
   0xe   : > { %344 = sbr.rel (%p341_p9) target bundleno = 1446 (0x5a6), region = 64  ;;  %488 = vmatprep.mubr.bf16.mxu0 (!%p341_p9), %v1972_v1  ;;  %505 = vst [vmem:[#allocation2] sm:$0xf] (!%p341_p9), %v1972_v1  ;;  %506 = vst [vmem:[#allocation2 + $0xc] sm:$0xf] (!%p341_p9), %v1972_v1  ;;  %1887 = vset.pattern.permute.xlu0 (!%p341_p9), %v1972_v1  ;;  %vm2723_vm7 = vcmask (!%p341_p9), 31744  }
   0xf   : > { %554 = vst [vmem:[#allocation3] sm:$0xfc] (!%p341_p9), %v1972_v1  ;;  %555 = vst [vmem:[#allocation3 + $0x8] sm:$0xfc] (!%p341_p9), %v1972_v1  ;;  %437 = vperm.xlu0 (!%p341_p9), %1887, %v429_v2   ;;  %v391_v3 = vand.u32 (!%p341_p9), 127, %v390_v0  ;;  %1888 = vset.pattern.permute.xlu1 (!%p341_p9), %v1972_v1  ;;  %s1974_s29 = smov (!%p341_p9), 111  }
  0x10   : > { %579 = vst [vmem:[#allocation3 + $0x10] sm:$0xfc] (!%p341_p9), %v1972_v1  ;;  %580 = vst [vmem:[#allocation3 + $0x18] sm:$0xfc] (!%p341_p9), %v1972_v1  ;;  %s2728_s30 = smov (!%p341_p9), 127   ;;  %s1978_s14 = smov (!%p341_p9), 17  }
  0x11   : > { %619 = vst [vmem:[#allocation3 + $0x20] sm:$0xfc] (!%p341_p9), %v1972_v1  ;;  %620 = vst [vmem:[#allocation3 + $0x28] sm:$0xfc] (!%p341_p9), %v1972_v1  ;;  %v392_v4 = vadd.s32 (!%p341_p9), 128, %v391_v3  ;;  %v397_v5 = vand.u32 (!%p341_p9), 15, %v391_v3 }
  0x12   : > { %653 = vst [vmem:[#allocation3 + $0x30] sm:$0xfc] (!%p341_p9), %v1972_v1  ;;  %654 = vst [vmem:[#allocation3 + $0x38] sm:$0xfc] (!%p341_p9), %v1972_v1  ;;  %s1979_s15 = smov (!%p341_p9), 112   ;;  %vm646_vm9 = vcmask (!%p341_p9), 7168  }
  0x13   : > { %665 = vst [vmem:[#allocation3 + $0x40] sm:$0xfc] (!%p341_p9), %v1972_v1  ;;  %666 = vst [vmem:[#allocation3 + $0x48] sm:$0xfc] (!%p341_p9), %v1972_v1  ;;  %v404_v7 = vand.u32 (!%p341_p9), 15, %v392_v4  ;;  %vm419_vm1 = vcmp.le.s32.totalorder (!%p341_p9), %v397_v5, 14 }
  0x14   : > { %697 = vst [vmem:[#allocation3 + $0x50] sm:$0xfc] (!%p341_p9), %v1972_v1  ;;  %698 = vst [vmem:[#allocation3 + $0x58] sm:$0xfc] (!%p341_p9), %v1972_v1  ;;  %vm417_vm2 = vcmp.ge.s32.totalorder (!%p341_p9), %v397_v5, 1  ;;  %vm527_vm12 = vcmask (!%p341_p9), 908288  }
  0x15   : > { %729 = vst [vmem:[#allocation3 + $0x60] sm:$0xfc] %v1972_v1  ;;  %730 = vst [vmem:[#allocation3 + $0x68] sm:$0xfc] %v1972_v1  ;;  %s381_s12 = scalar_select %p380_p10, %s2067_s21, 1  ;;  %vm420_vm3 = vcmp.le.s32.totalorder %v404_v7, 14 }
  0x16   : > { %754 = vst [vmem:[#allocation3 + $0x70] sm:$0xfc] %v1972_v1  ;;  %755 = vst [vmem:[#allocation3 + $0x78] sm:$0xfc] %v1972_v1  ;;  %vm418_vm4 = vcmp.ge.s32.totalorder %v404_v7, 1  ;;  %s2745_s22 = smov 127  }
  0x17   : > { %786 = vst [vmem:[#allocation3 + $0x80] sm:$0xfc] %v1972_v1  ;;  %787 = vst [vmem:[#allocation3 + $0x88] sm:$0xfc] %v1972_v1  ;;  %s1830_s13 = sshll.u32 %s381_s12, 3  ;;  %s2732_s12 = smov 1  }
  0x18   : > { %s384_s16 = scalar_lea.vmem %s2711_s0, %s1830_s13  ;;  %vm587_vm5 = vmpackc.low %vm420_vm3, %vm419_vm1  ;;  %s1977_s13 = smov 15   ;;  %v1891_v16 = vld [vmem:[#allocation2 + $0xc] ss:$0 sps:$4 sm:$0x33]   ;;  %v1980_v28 = vmov 4284677986  }
  0x19   : > { %v2127_v6 = vld [vmem:[%s384_s16] sm:$0xff]  ;;  %v588_v13 = vsel %vm587_vm5, 65537, %v1972_v1  ;;  %vm522_vm6 = vmpackc.low %vm418_vm4, %vm417_vm2  ;;  %v1289_v17 = vld [vmem:[#allocation2 + $0xc] sm:$0xf]  ;;  %s2734_s16 = smov 16   ;;  %vm592_vm1 = vcmask 924672  }
  0x1a   : > { %v2131_v8 = vcombine.high %v2127_v6, %v2127_v6  ;;  %v426_v9 = vpack.c.bf16 %v2127_v6, %v2127_v6  ;;  %589 = vrot.lane.b32.xlu1 %v588_v13, %s2726_s25  ;;  %v523_v15 = vsel %vm522_vm6, 65537, %v1972_v1  ;;  %v1315_v18 = vld [vmem:[#allocation2 + $0xc] sm:$0xf]  ;;  %vm612_vm5 = vcmask 121856   ;;  %s2746_s24 = smov 113  }
  0x1b   : > { %524 = vrot.lane.b32.xlu0 %v523_v15, %s1974_s29  ;;  %v2153_v19 = vld [vmem:[#allocation2 + $0xc] sm:$0xf]  ;;  %vm2731_vm6 = vcmask 1039360  }
  0x1c   : > { %v427_v10 = vpack.c.bf16 %v2131_v8, %v2131_v8  ;;  %v1833_v11 = vpack.c.bf16 %v2131_v8, %v2127_v6  ;;  %v451_v12 = vsel %vm2724_vm0, %v426_v9, 0  ;;  %v1365_v20 = vld [vmem:[#allocation2 + $0xc] sm:$0xf] }
  0x1d   : > { %v987_v21 = vld [vmem:[#allocation2 + $0xc] sm:$0x3] }
  0x1e   : > { %1727 = vmatprep.subr.msk.bf16.mxu0 %vm2724_vm0, %v427_v10  ;;  %623 = vrot.lane.b32.xlu1 %v523_v15, %s2728_s30  ;;  %v668_v22 = vld [vmem:[#allocation2 + $0xc] sm:$0x3] }
  0x1f   : > { %457 = vmatpush1.bf16.msra.mxu0 %v451_v12  ;;  %669 = vrot.lane.b32.xlu0 %v588_v13, %s2732_s12  ;;  %v700_v23 = vld [vmem:[#allocation2 + $0xc] sm:$0x3] }
  0x20   : > { %v757_v24 = vld [vmem:[#allocation2 + $0xc] sm:$0x3] }
  0x21   : > { %v1013_v25 = vld [vmem:[#allocation2 + $0xc] sm:$0x3] }
  0x22   : > { %1728 = vmatmul.mubr.msk.bf16.vlgmr.msra.gmra.mrb[0].mxu0 %vm2723_vm7, %v1890_v14  ;;  %701 = vrot.lane.b32.xlu1 %v523_v15, %s1977_s13  ;;  %v2155_v26 = vld [vmem:[#allocation2 + $0xc] ss:$0 sps:$4 sm:$0x33]   ;;  %vm547_vm7 = vcmask 138240  }
  0x23   : > { %758 = vrot.lane.b32.xlu0 %v588_v13, %s1978_s14  ;;  %v1063_v27 = vld [vmem:[#allocation2 + $0xc] sm:$0x3] }
  0x24   : > { %1470 = vst [vmem:[#allocation2 + $0xc] sm:$0x3] %v1980_v28 }
  0x27   : > { %745 = vrot.lane.b32.xlu0 %v1891_v16, %s1979_s15 }
  0x8c   : > { %v2159_v29 = vpop.permute.xlu1 %589 }
  0x8e   : > { %v438_v30 = vpop.permute.xlu0 %437 }
  0x90   : > { %v2161_v31 = vpop.permute.xlu1 %623 }
  0x92   : > { %v2163_v32 = vpop.permute.xlu0 %524 }
  0x93   : > { %v526_v63 = vrot.slane %v2163_v32, 4 }
  0x94   : > { %v2165_v33 = vpop.permute.xlu1 %701 }
  0x95   : > { %v703_v34 = vrot.slane %v2165_v33, 4  ;;  %vm2213_vm13 = vcmp.ne.s16.totalorder %v526_v63, 0 }
  0x96   : > { %v670_v35 = vpop.permute.xlu0 %669 }
  0x97   : > { %vm706_vm8 = vcmp.ne.s16.totalorder %v703_v34, 0  ;;  %v671_v37 = vrot.slane %v670_v35, 4 }
  0x98   : > { %v2170_v36 = vsel %vm706_vm8, %v1013_v25, 0  ;;  %v2172_v38 = vsel %vm706_vm8, %v1315_v18, 0  ;;  %v708_v44 = vsel %vm706_vm8, %v700_v23, 0 }
  0x99   : > { %v2175_v39 = vsel %vm646_vm9, %v671_v37, %v670_v35  ;;  %vm2177_vm10 = vcmp.ne.s16.totalorder %v671_v37, 0  ;;  %v1749_v49 = vcombine.low %v708_v44, %v708_v44  ;;  %v2222_v35 = vsel %vm527_vm12, %v526_v63, %v2163_v32 }
  0x9a   : > { %v2181_v41 = vpop.permute.xlu0 %758  ;;  %v989_v42 = vsel %vm2177_vm10, %v987_v21, 0  ;;  %v676_v43 = vsel %vm2177_vm10, %v668_v22, 0  ;;  %v2190_v48 = vsel %vm2177_vm10, %v1289_v17, 0  ;;  %vm2730_vm15 = vcmp.ne.s16.totalorder %v2222_v35, 0 }
  0x9b   : > { %v760_v45 = vrot.slane %v2181_v41, 4  ;;  %v1776_v46 = vcombine.low %v989_v42, %v989_v42  ;;  %v1746_v47 = vcombine.low %v676_v43, %v676_v43  ;;  %vm673_vm3 = vcmp.ne.s16.totalorder %v2175_v39, 0 }
  0x9c   : > { %v1809_v39 = vcombine.low %v2172_v38, %v2172_v38 }
  0x9d   : > { %vm763_vm11 = vcmp.ne.s16.totalorder %v760_v45, 0  ;;  %1002 = vrot.lane.b32.xlu0 %v1776_v46, %s2728_s30  ;;  %689 = vrot.lane.b32.xlu1 %v1746_v47, %s2728_s30  ;;  %v625_v46 = vrot.slane %v2161_v31, 4 }
  0x9e   : > { %v765_v50 = vsel %vm763_vm11, %v757_v24, 0  ;;  %v2196_v51 = vsel %vm763_vm11, %v1063_v27, 0  ;;  %v2198_v52 = vsel %vm763_vm11, %v1365_v20, 0 }
  0x9f   : > { %v1755_v53 = vcombine.low %v765_v50, %v765_v50  ;;  %vm2238_vm2 = vcmp.ne.s16.totalorder %v625_v46, 0  ;;  %v1815_v38 = vcombine.low %v2198_v52, %v2198_v52 }
  0xa1   : > { %721 = vrot.lane.b32.xlu1 %v1749_v49, %s2726_s25  ;;  %778 = vrot.lane.b32.xlu0 %v1755_v53, %s1974_s29 }
  0xf5   : > { %v2202_v54 = vpop.f32.mrb[0].mxu0 }
  0xf6   : > { %v2204_v55 = vpop.f32.mrb[1].mxu0 }
  0xf7   : > { %v494_v56 = vpop.f32.mrb[2].mxu0 }
  0xf8   : > { %v495_v57 = vadd.f32 %v494_v56, %v438_v30  ;;  %v496_v58 = vpop.f32.mrb[3].mxu0 }
  0xf9   : > { %v497_v59 = vadd.f32 %v496_v58, %v438_v30  ;;  %v591_v30 = vrot.slane %v2159_v29, 4 }
  0xfa   : > { %v501_v60 = vmax.f32 %v495_v57, 0.0 }
  0xfb   : > { %v502_v61 = vmax.f32 %v497_v59, 0.0  ;;  %vm2226_vm14 = vcmp.ne.s16.totalorder %v591_v30, 0  ;;  %v2249_v57 = vsel %vm592_vm1, %v591_v30, %v2159_v29 }
  0xfc   : > { %vm2725_vm4 = vcmp.ne.s16.totalorder %v2249_v57, 0 }
  0xfd   : > { %v1831_v62 = vpack.c.bf16 %v502_v61, %v501_v60 }
  0xff   : > { %515 = vst [vmem:[#allocation2 + $0x4] sm:$0x33] %v1831_v62  ;;  %v1759_v0 = vrot.slane %v1831_v62, 10 }
 0x106   : > { %v516_v2 = vld [vmem:[#allocation2] sm:$0x33]  ;;  %v517_v3 = vld [vmem:[#allocation2 + $0x8] sm:$0x3] }
 0x107   : > { %v556_v4 = vld [vmem:[#allocation2] sm:$0x33]  ;;  %v557_v5 = vld [vmem:[#allocation2 + $0x8] sm:$0x3]  ;;  %v532_v27 = vsel %vm2213_vm13, %v517_v3, 0  ;;  %v531_v32 = vsel %vm2730_vm15, %v516_v2, 0  ;;  %v2268_v3 = vsel %vm612_vm5, %v703_v34, %v2165_v33 }
 0x108   : > { %v581_v7 = vld [vmem:[#allocation2] sm:$0x33]  ;;  %v582_v9 = vld [vmem:[#allocation2 + $0x8] sm:$0x3]  ;;  %v1734_v10 = vcombine.high %v556_v4, %v556_v4  ;;  %v1735_v15 = vcombine.low %v557_v5, %v557_v5  ;;  %v1733_v24 = vcombine.low %v556_v4, %v556_v4  ;;  %v1732_v42 = vcombine.low %v532_v27, %v532_v27 }
 0x109   : > { %v2207_v12 = vld [vmem:[#allocation2] sm:$0x33]  ;;  %v622_v13 = vld [vmem:[#allocation2 + $0x8] sm:$0x3]  ;;  %v597_v44 = vsel %vm2226_vm14, %v582_v9, 0  ;;  %v1731_v53 = vcombine.high %v531_v32, %v531_v32  ;;  %v1730_v60 = vcombine.low %v531_v32, %v531_v32  ;;  %v596_v29 = vsel %vm2725_vm4, %v581_v7, 0 }
 0x10a   : > { %v655_v14 = vld [vmem:[#allocation2 + $0x4] sm:$0x33]  ;;  %568 = vrot.lane.b32.xlu0 %v1734_v10, %s2734_s16  ;;  %570 = vrot.lane.b32.xlu1 %v1735_v15, %s2734_s16  ;;  %v1738_v49 = vcombine.low %v597_v44, %v597_v44  ;;  %v631_v56 = vsel %vm2238_vm2, %v622_v13, 0  ;;  %v1737_v4 = vcombine.high %v596_v29, %v596_v29  ;;  %v2272_v5 = vsel %vm2731_vm6, %v625_v46, %v2161_v31 }
 0x10b   : > { %v667_v16 = vld [vmem:[#allocation2 + $0x4] sm:$0x33]  ;;  %v1743_v20 = vcombine.high %v655_v14, %v655_v14  ;;  %v1742_v21 = vcombine.low %v655_v14, %v655_v14  ;;  %v1741_v59 = vcombine.low %v631_v56, %v631_v56  ;;  %vm705_vm8 = vcmp.ne.s16.totalorder %v2268_v3, 0 }
 0x10c   : > { %v731_v17 = vld [vmem:[#allocation2 + $0x4] sm:$0x33]  ;;  %v675_v61 = vsel %vm673_vm3, %v667_v16, 0  ;;  %vm628_vm11 = vcmp.ne.s16.totalorder %v2272_v5, 0  ;;  %v1736_v34 = vcombine.low %v596_v29, %v596_v29  ;;  %v2289_v9 = vsel %vm547_vm7, %v760_v45, %v2181_v41 }
 0x10d   : > { %v2209_v18 = vld [vmem:[#allocation2 + $0x4] sm:$0x33]  ;;  %664 = vst [vmem:[#allocation3 + $0x48] sm:$0x3] %v1743_v20  ;;  %663 = vst [vmem:[#allocation3 + $0x40] sm:$0x3] %v1742_v21  ;;  %v1751_v25 = vcombine.high %v731_v17, %v731_v17  ;;  %v1750_v43 = vcombine.low %v731_v17, %v731_v17  ;;  %v1745_v2 = vcombine.high %v675_v61, %v675_v61 }
 0x10e   : > { %v699_v22 = vld [vmem:[#allocation2 + $0x4] sm:$0x33]  ;;  %566 = vrot.lane.b32.xlu0 %v1733_v24, %s2734_s16  ;;  %v1744_v7 = vcombine.low %v675_v61, %v675_v61  ;;  %v630_v31 = vsel %vm628_vm11, %v2207_v12, 0  ;;  %vm762_vm0 = vcmp.ne.s16.totalorder %v2289_v9, 0 }
 0x10f   : > { %871 = vst [vmem:[#allocation2 + $0x4] sm:$0x33] %v1759_v0  ;;  %743 = vrot.lane.b32.xlu1 %v1751_v25, %s1979_s15  ;;  %v707_v33 = vsel %vm705_vm8, %v699_v22, 0  ;;  %v1740_v15 = vcombine.high %v630_v31, %v630_v31  ;;  %v1739_v16 = vcombine.low %v630_v31, %v630_v31  ;;  %v764_v41 = vsel %vm762_vm0, %v2209_v18, 0 }
 0x110   : > { %v1748_v10 = vcombine.high %v707_v33, %v707_v33  ;;  %v1747_v12 = vcombine.low %v707_v33, %v707_v33  ;;  %v1754_v17 = vcombine.high %v764_v41, %v764_v41 }
 0x112   : > { %545 = vrot.lane.b32.xlu0 %v1732_v42, %s1978_s14 }
 0x113   : > { %741 = vrot.lane.b32.xlu1 %v1750_v43, %s1979_s15 }
 0x114   : > { %v2242_v50 = vld [vmem:[#allocation3 + $0x48] sm:$0xff]  ;;  %v2253_v58 = vld [vmem:[#allocation3 + $0x40] sm:$0xff] }
 0x115   : > { %985 = vst [vmem:[#allocation3 + $0x48] sm:$0xfc] %v1972_v1  ;;  %984 = vst [vmem:[#allocation3 + $0x40] sm:$0xfc] %v1972_v1 }
 0x116   : > { %610 = vrot.lane.b32.xlu0 %v1738_v49, %s1977_s13  ;;  %v974_v62 = vld [vmem:[#allocation2 + $0x4] sm:$0x33] }
 0x117   : > { %543 = vrot.lane.b32.xlu1 %v1731_v53, %s1978_s14  ;;  %v1773_v63 = vcombine.high %v974_v62, %v974_v62  ;;  %v1772_v0 = vcombine.low %v974_v62, %v974_v62  ;;  %v1892_v45 = vld [vmem:[#allocation2 + $0x8] ss:$0 sps:$4 sm:$0x33]   ;;  %v898_v20 = vld [vmem:[#allocation2] sm:$0x33] }
 0x118   : > { %v873_v21 = vld [vmem:[#allocation2 + $0x8] sm:$0x3]  ;;  %v872_v22 = vld [vmem:[#allocation2] sm:$0x33]  ;;  %v1763_v24 = vcombine.low %v898_v20, %v898_v20  ;;  %v1764_v25 = vcombine.high %v898_v20, %v898_v20 }
 0x119   : > { %983 = vst [vmem:[#allocation3 + $0x48] sm:$0x3] %v1773_v63  ;;  %982 = vst [vmem:[#allocation3 + $0x40] sm:$0x3] %v1772_v0  ;;  %v875_v27 = vsel %vm2213_vm13, %v873_v21, 0  ;;  %v874_v18 = vsel %vm2730_vm15, %v872_v22, 0  ;;  %v1753_v63 = vcombine.low %v764_v41, %v764_v41 }
 0x11a   : > { %644 = vrot.lane.b32.xlu0 %v1741_v59, %s2732_s12  ;;  %v922_v30 = vld [vmem:[#allocation2] sm:$0x33]  ;;  %v1762_v42 = vcombine.low %v875_v27, %v875_v27  ;;  %v1761_v43 = vcombine.high %v874_v18, %v874_v18  ;;  %v923_v46 = vld [vmem:[#allocation2 + $0x8] sm:$0x3]  ;;  %v1760_v32 = vcombine.low %v874_v18, %v874_v18  ;;  %vm747_vm15 = vcmask 916480  }
 0x11b   : > { %541 = vrot.lane.b32.xlu1 %v1730_v60, %s1978_s14  ;;  %v924_v44 = vsel %vm2725_vm4, %v922_v30, 0  ;;  %v925_v53 = vsel %vm2226_vm14, %v923_v46, 0  ;;  %v948_v56 = vld [vmem:[#allocation2] sm:$0x33]  ;;  %v949_v62 = vld [vmem:[#allocation2 + $0x8] sm:$0x3]  ;;  %v746_v30 = vpop.permute.xlu0 %745 }
 0x11c   : > { %v1767_v49 = vcombine.high %v924_v44, %v924_v44  ;;  %v1768_v59 = vcombine.low %v925_v53, %v925_v53  ;;  %v1766_v60 = vcombine.low %v924_v44, %v924_v44  ;;  %v950_v61 = vsel %vm628_vm11, %v948_v56, 0  ;;  %v1012_v31 = vld [vmem:[#allocation2 + $0x4] sm:$0x33] }
 0x11d   : > { %v1770_v29 = vcombine.high %v950_v61, %v950_v61  ;;  %v951_v0 = vsel %vm2238_vm2, %v949_v62, 0  ;;  %v1769_v33 = vcombine.low %v950_v61, %v950_v61  ;;  %vm572_vm4 = vcmask 130048   ;;  %v1107_v18 = vld [vmem:[%s2717_s6] sm:$0xff] }
 0x11e   : > { %687 = vrot.lane.b32.xlu0 %v1745_v2, %s2728_s30  ;;  %v1779_v2 = vcombine.low %v2170_v36, %v2170_v36  ;;  %v1014_v36 = vsel %vm705_vm8, %v1012_v31, 0 }
 0x11f   : > { %608 = vrot.lane.b32.xlu1 %v1737_v4, %s1977_s13  ;;  %v1771_v4 = vcombine.low %v951_v0, %v951_v0  ;;  %v1777_v41 = vcombine.low %v1014_v36, %v1014_v36  ;;  %v1778_v20 = vcombine.high %v1014_v36, %v1014_v36 }
 0x120   : > { %v2291_v13 = vld [vmem:[#allocation3 + $0x48] sm:$0xff]  ;;  %v2293_v14 = vld [vmem:[#allocation3 + $0x40] sm:$0xff] }
 0x121   : > { %1287 = vst [vmem:[#allocation3 + $0x48] sm:$0xf0] %v1972_v1  ;;  %1286 = vst [vmem:[#allocation3 + $0x40] sm:$0xf0] %v1972_v1 }
 0x122   : > { %685 = vrot.lane.b32.xlu0 %v1744_v7, %s2728_s30  ;;  %v986_v7 = vld [vmem:[#allocation2 + $0x4] sm:$0x33] }
 0x123   : > { %606 = vrot.lane.b32.xlu1 %v1736_v34, %s1977_s13  ;;  %v988_v34 = vsel %vm673_vm3, %v986_v7, 0 }
 0x126   : > { %719 = vrot.lane.b32.xlu0 %v1748_v10, %s2726_s25  ;;  %v1038_v10 = vld [vmem:[#allocation2 + $0x4] sm:$0x33] }
 0x127   : > { %642 = vrot.lane.b32.xlu1 %v1740_v15, %s2732_s12  ;;  %v1774_v15 = vcombine.low %v988_v34, %v988_v34  ;;  %v1780_v22 = vcombine.low %v1038_v10, %v1038_v10 }
 0x12a   : > { %717 = vrot.lane.b32.xlu0 %v1747_v12, %s2726_s25  ;;  %v1781_v12 = vcombine.high %v1038_v10, %v1038_v10 }
 0x12b   : > { %640 = vrot.lane.b32.xlu1 %v1739_v16, %s2732_s12  ;;  %v1062_v16 = vld [vmem:[#allocation2 + $0x4] sm:$0x33] }
 0x12e   : > { %912 = vrot.lane.b32.xlu0 %v1892_v45, %s2734_s16  ;;  %v1064_v45 = vsel %vm762_vm0, %v1062_v16, 0 }
 0x12f   : > { %776 = vrot.lane.b32.xlu1 %v1754_v17, %s1974_s29  ;;  %v1775_v17 = vcombine.high %v988_v34, %v988_v34  ;;  %v1783_v21 = vcombine.low %v1064_v45, %v1064_v45 }
 0x132   : > { %908 = vrot.lane.b32.xlu0 %v1763_v24, %s2734_s16  ;;  %v2353_v24 = vld [vmem:[%s2716_s5] sm:$0xff] }
 0x133   : > { %910 = vrot.lane.b32.xlu1 %v1764_v25, %s2734_s16  ;;  %v1785_v25 = vcombine.low %v2196_v51, %v2196_v51  ;;  %v1787_v27 = vcombine.high %v2353_v24, %v2353_v24 }
 0x135   : > { %1788 = vmatprep.mubr.msk.bf16.mxu0 %vm572_vm4, %v1787_v27 }
 0x136   : > { %888 = vrot.lane.b32.xlu0 %v1762_v42, %s1978_s14  ;;  %v2364_v42 = vpop.permute.xlu0 %1002 }
 0x137   : > { %886 = vrot.lane.b32.xlu1 %v1761_v43, %s1978_s14  ;;  %v690_v43 = vpop.permute.xlu1 %689 }
 0x13a   : > { %884 = vrot.lane.b32.xlu0 %v1760_v32, %s1978_s14  ;;  %v2366_v44 = vpop.permute.xlu0 %778 }
 0x13b   : > { %936 = vrot.lane.b32.xlu1 %v1767_v49, %s1977_s13  ;;  %v722_v51 = vpop.permute.xlu1 %721 }
 0x13e   : > { %938 = vrot.lane.b32.xlu0 %v1768_v59, %s1977_s13 }
 0x13f   : > { %934 = vrot.lane.b32.xlu1 %v1766_v60, %s1977_s13 }
 0x142   : > { %962 = vrot.lane.b32.xlu0 %v1770_v29, %s2732_s12 }
 0x143   : > { %774 = vrot.lane.b32.xlu1 %v1753_v63, %s1974_s29 }
 0x146   : > { %1028 = vrot.lane.b32.xlu0 %v1779_v2, %s2726_s25 }
 0x147   : > { %964 = vrot.lane.b32.xlu1 %v1771_v4, %s2732_s12 }
 0x14a   : > { %1052 = vrot.lane.b32.xlu0 %v2155_v26, %s1979_s15  ;;  %v1784_v26 = vcombine.high %v1064_v45, %v1064_v45 }
 0x14b   : > { %960 = vrot.lane.b32.xlu1 %v1769_v33, %s2732_s12 }
 0x14e   : > { %998 = vrot.lane.b32.xlu0 %v1774_v15, %s2728_s30 }
 0x14f   : > { %1050 = vrot.lane.b32.xlu1 %v1781_v12, %s1979_s15 }
 0x152   : > { %1024 = vrot.lane.b32.xlu0 %v1777_v41, %s2726_s25 }
 0x153   : > { %1000 = vrot.lane.b32.xlu1 %v1775_v17, %s2728_s30  ;;  %s1983_s30 = smov 126  }
 0x156   : > { %1076 = vrot.lane.b32.xlu0 %v1784_v26, %s1974_s29 }
 0x157   : > { %1026 = vrot.lane.b32.xlu1 %v1778_v20, %s2726_s25  ;;  %s1982_s25 = smov 96  }
 0x15a   : > { %1074 = vrot.lane.b32.xlu0 %v1783_v21, %s1974_s29 }
 0x15b   : > { %1048 = vrot.lane.b32.xlu1 %v1780_v22, %s1979_s15 }
 0x15f   : > { %1078 = vrot.lane.b32.xlu1 %v1785_v25, %s1974_s29 }
 0x163   : > { %1110 = vperm.xlu1 %1888, %v1107_v18  }
 0x17c   : > { %v569_v46 = vpop.permute.xlu0 %568  ;;  %v571_v32 = vpop.permute.xlu1 %570 }
 0x17d   : > { %v574_v49 = vsel %vm572_vm4, %v569_v46, %v571_v32 }
 0x17e   : > { %578 = vst [vmem:[#allocation3 + $0x18] sm:$0x3] %v574_v49 }
 0x180   : > { %v567_v53 = vpop.permute.xlu0 %566 }
 0x181   : > { %v744_v56 = vpop.permute.xlu1 %743  ;;  %v573_v59 = vsel %vm572_vm4, %v567_v53, %v569_v46 }
 0x182   : > { %v749_v60 = vsel %vm747_vm15, %v744_v56, %v746_v30  ;;  %577 = vst [vmem:[#allocation3 + $0x10] sm:$0x3] %v573_v59 }
 0x183   : > { %753 = vst [vmem:[#allocation3 + $0x78] sm:$0x3] %v749_v60 }
 0x184   : > { %v546_v61 = vpop.permute.xlu0 %545 }
 0x185   : > { %v742_v62 = vpop.permute.xlu1 %741  ;;  %v792_v63 = vld [vmem:[#allocation3 + $0x18] sm:$0xff] }
 0x186   : > { %v748_v29 = vsel %vm747_vm15, %v742_v62, %v744_v56  ;;  %921 = vst [vmem:[#allocation3 + $0x18] sm:$0xfc] %v1972_v1 }
 0x187   : > { %752 = vst [vmem:[#allocation3 + $0x70] sm:$0x3] %v748_v29 }
 0x188   : > { %v611_v0 = vpop.permute.xlu0 %610 }
 0x189   : > { %v544_v2 = vpop.permute.xlu1 %543  ;;  %v791_v4 = vld [vmem:[#allocation3 + $0x10] sm:$0xff] }
 0x18a   : > { %v549_v7 = vsel %vm547_vm7, %v544_v2, %v546_v61  ;;  %920 = vst [vmem:[#allocation3 + $0x10] sm:$0xfc] %v1972_v1  ;;  %v2375_v33 = vld [vmem:[#allocation3 + $0x78] sm:$0xff] }
 0x18b   : > { %553 = vst [vmem:[#allocation3 + $0x8] sm:$0x3] %v549_v7  ;;  %1061 = vst [vmem:[#allocation3 + $0x78] sm:$0xfc] %v1972_v1 }
 0x18c   : > { %v645_v34 = vpop.permute.xlu0 %644 }
 0x18d   : > { %v542_v31 = vpop.permute.xlu1 %541 }
 0x18e   : > { %v548_v10 = vsel %vm547_vm7, %v542_v31, %v544_v2  ;;  %v2379_v15 = vld [vmem:[#allocation3 + $0x70] sm:$0xff] }
 0x18f   : > { %552 = vst [vmem:[#allocation3] sm:$0x3] %v548_v10  ;;  %1060 = vst [vmem:[#allocation3 + $0x70] sm:$0xfc] %v1972_v1 }
 0x190   : > { %v688_v36 = vpop.permute.xlu0 %687 }
 0x191   : > { %v692_v12 = vsel %vm2731_vm6, %v688_v36, %v690_v43  ;;  %v609_v16 = vpop.permute.xlu1 %608 }
 0x192   : > { %696 = vst [vmem:[#allocation3 + $0x58] sm:$0x3] %v692_v12  ;;  %v614_v41 = vsel %vm612_vm5, %v609_v16, %v611_v0  ;;  %v790_v45 = vld [vmem:[#allocation3 + $0x8] sm:$0xff] }
 0x193   : > { %618 = vst [vmem:[#allocation3 + $0x28] sm:$0x3] %v614_v41  ;;  %823 = vmatprep.subr.bf16.mxu1 %v790_v45  ;;  %897 = vst [vmem:[#allocation3 + $0x8] sm:$0xfc] %v1972_v1 }
 0x194   : > { %v686_v17 = vpop.permute.xlu0 %685 }
 0x195   : > { %v691_v26 = vsel %vm2731_vm6, %v686_v17, %v688_v36  ;;  %v607_v20 = vpop.permute.xlu1 %606 }
 0x196   : > { %695 = vst [vmem:[#allocation3 + $0x50] sm:$0x3] %v691_v26  ;;  %v613_v21 = vsel %vm612_vm5, %v607_v20, %v609_v16  ;;  %v789_v22 = vld [vmem:[#allocation3] sm:$0xff] }
 0x197   : > { %617 = vst [vmem:[#allocation3 + $0x20] sm:$0x3] %v613_v21  ;;  %824 = vmatpush1.bf16.msra.mxu1 %v789_v22  ;;  %896 = vst [vmem:[#allocation3] sm:$0xfc] %v1972_v1 }
 0x198   : > { %825 = vmatprep.subr.bf16.mxu1 %v792_v63  ;;  %v720_v25 = vpop.permute.xlu0 %719 }
 0x199   : > { %v724_v27 = vsel %vm592_vm1, %v720_v25, %v722_v51  ;;  %v643_v18 = vpop.permute.xlu1 %642  ;;  %v800_v30 = vld [vmem:[#allocation3 + $0x58] sm:$0xff] }
 0x19a   : > { %728 = vst [vmem:[#allocation3 + $0x68] sm:$0x3] %v724_v27  ;;  %v648_v43 = vsel %vm646_vm9, %v643_v18, %v645_v34  ;;  %v794_v46 = vld [vmem:[#allocation3 + $0x28] sm:$0xff]  ;;  %1011 = vst [vmem:[#allocation3 + $0x58] sm:$0xfc] %v1972_v1 }
 0x19b   : > { %652 = vst [vmem:[#allocation3 + $0x38] sm:$0x3] %v648_v43  ;;  %826 = vmatpush1.bf16.msra.mxu1 %v791_v4  ;;  %947 = vst [vmem:[#allocation3 + $0x28] sm:$0xfc] %v1972_v1 }
 0x19c   : > { %827 = vmatprep.subr.bf16.mxu1 %v794_v46  ;;  %v718_v32 = vpop.permute.xlu0 %717 }
 0x19d   : > { %v723_v49 = vsel %vm592_vm1, %v718_v32, %v720_v25  ;;  %v641_v53 = vpop.permute.xlu1 %640  ;;  %v799_v56 = vld [vmem:[#allocation3 + $0x50] sm:$0xff] }
 0x19e   : > { %727 = vst [vmem:[#allocation3 + $0x60] sm:$0x3] %v723_v49  ;;  %v647_v51 = vsel %vm646_vm9, %v641_v53, %v643_v18  ;;  %v793_v59 = vld [vmem:[#allocation3 + $0x20] sm:$0xff]  ;;  %1010 = vst [vmem:[#allocation3 + $0x50] sm:$0xfc] %v1972_v1 }
 0x19f   : > { %651 = vst [vmem:[#allocation3 + $0x30] sm:$0x3] %v647_v51  ;;  %828 = vmatpush1.bf16.msra.mxu1 %v793_v59  ;;  %946 = vst [vmem:[#allocation3 + $0x20] sm:$0xfc] %v1972_v1 }
 0x1a0   : > { %v913_v60 = vpop.permute.xlu0 %912 }
 0x1a1   : > { %v777_v61 = vpop.permute.xlu1 %776  ;;  %v802_v62 = vld [vmem:[#allocation3 + $0x68] sm:$0xff] }
 0x1a2   : > { %v781_v29 = vsel %vm527_vm12, %v777_v61, %v2366_v44  ;;  %v796_v63 = vld [vmem:[#allocation3 + $0x38] sm:$0xff]  ;;  %1037 = vst [vmem:[#allocation3 + $0x68] sm:$0xfc] %v1972_v1 }
 0x1a3   : > { %785 = vst [vmem:[#allocation3 + $0x88] sm:$0x3] %v781_v29  ;;  %829 = vmatprep.subr.bf16.mxu1 %v796_v63  ;;  %973 = vst [vmem:[#allocation3 + $0x38] sm:$0xfc] %v1972_v1 }
 0x1a4   : > { %v909_v0 = vpop.permute.xlu0 %908 }
 0x1a5   : > { %v911_v2 = vpop.permute.xlu1 %910  ;;  %v801_v4 = vld [vmem:[#allocation3 + $0x60] sm:$0xff] }
 0x1a6   : > { %v914_v7 = vsel %vm572_vm4, %v909_v0, %v911_v2  ;;  %v915_v34 = vsel %vm572_vm4, %v911_v2, %v913_v60  ;;  %v795_v31 = vld [vmem:[#allocation3 + $0x30] sm:$0xff]  ;;  %1036 = vst [vmem:[#allocation3 + $0x60] sm:$0xfc] %v1972_v1 }
 0x1a7   : > { %918 = vst [vmem:[#allocation3 + $0x10] sm:$0x3] %v914_v7  ;;  %919 = vst [vmem:[#allocation3 + $0x18] sm:$0x3] %v915_v34  ;;  %830 = vmatpush1.bf16.msra.mxu1 %v795_v31 }
 0x1a8   : > { %972 = vst [vmem:[#allocation3 + $0x30] sm:$0xfc] %v1972_v1  ;;  %831 = vmatprep.subr.bf16.mxu1 %v2242_v50  ;;  %v889_v44 = vpop.permute.xlu0 %888 }
 0x1a9   : > { %v887_v10 = vpop.permute.xlu1 %886 }
 0x1aa   : > { %v891_v36 = vsel %vm547_vm7, %v887_v10, %v889_v44  ;;  %v806_v12 = vld [vmem:[#allocation3 + $0x88] sm:$0xff] }
 0x1ab   : > { %895 = vst [vmem:[#allocation3 + $0x8] sm:$0x3] %v891_v36  ;;  %832 = vmatpush1.bf16.msra.mxu1 %v2253_v58  ;;  %1087 = vst [vmem:[#allocation3 + $0x88] sm:$0xfc] %v1972_v1 }
 0x1ac   : > { %833 = vmatprep.subr.bf16.mxu1 %v800_v30  ;;  %v885_v16 = vpop.permute.xlu0 %884 }
 0x1ad   : > { %v890_v41 = vsel %vm547_vm7, %v885_v16, %v887_v10  ;;  %v937_v45 = vpop.permute.xlu1 %936 }
 0x1ae   : > { %894 = vst [vmem:[#allocation3] sm:$0x3] %v890_v41  ;;  %v1092_v17 = vld [vmem:[#allocation3 + $0x18] sm:$0xff]  ;;  %v1091_v26 = vld [vmem:[#allocation3 + $0x10] sm:$0xff] }
 0x1af   : > { %834 = vmatpush1.bf16.msra.mxu1 %v799_v56  ;;  %1223 = vst [vmem:[#allocation3 + $0x18] sm:$0xf0] %v1972_v1  ;;  %1222 = vst [vmem:[#allocation3 + $0x10] sm:$0xf0] %v1972_v1 }
 0x1b0   : > { %835 = vmatprep.subr.bf16.mxu1 %v802_v62  ;;  %v939_v50 = vpop.permute.xlu0 %938 }
 0x1b1   : > { %v941_v20 = vsel %vm612_vm5, %v937_v45, %v939_v50  ;;  %v935_v58 = vpop.permute.xlu1 %934 }
 0x1b2   : > { %945 = vst [vmem:[#allocation3 + $0x28] sm:$0x3] %v941_v20  ;;  %v940_v21 = vsel %vm612_vm5, %v935_v58, %v937_v45  ;;  %v1090_v22 = vld [vmem:[#allocation3 + $0x8] sm:$0xff] }
 0x1b3   : > { %944 = vst [vmem:[#allocation3 + $0x20] sm:$0x3] %v940_v21  ;;  %836 = vmatpush1.bf16.msra.mxu1 %v801_v4  ;;  %1122 = vmatprep.subr.bf16.mxu0 %v1090_v22  ;;  %1199 = vst [vmem:[#allocation3 + $0x8] sm:$0xf0] %v1972_v1  ;;  %v1786_v21 = vcombine.low %v2353_v24, %v2353_v24 }
 0x1b4   : > { %837 = vmatprep.subr.bf16.mxu1 %v2375_v33  ;;  %v963_v25 = vpop.permute.xlu0 %962 }
 0x1b5   : > { %v775_v27 = vpop.permute.xlu1 %774  ;;  %v1089_v18 = vld [vmem:[#allocation3] sm:$0xff] }
 0x1b6   : > { %v780_v30 = vsel %vm527_vm12, %v775_v27, %v777_v61  ;;  %1123 = vmatpush1.bf16.msra.mxu0 %v1089_v18  ;;  %1198 = vst [vmem:[#allocation3] sm:$0xf0] %v1972_v1 }
 0x1b7   : > { %784 = vst [vmem:[#allocation3 + $0x80] sm:$0x3] %v780_v30  ;;  %838 = vmatpush1.bf16.msra.mxu1 %v2379_v15  ;;  %1124 = vmatprep.subr.bf16.mxu0 %v1092_v17 }
 0x1b8   : > { %839 = vmatprep.subr.bf16.mxu1 %v806_v12  ;;  %v1029_v43 = vpop.permute.xlu0 %1028 }
 0x1b9   : > { %v965_v46 = vpop.permute.xlu1 %964  ;;  %v1094_v32 = vld [vmem:[#allocation3 + $0x28] sm:$0xff] }
 0x1ba   : > { %v967_v49 = vsel %vm646_vm9, %v963_v25, %v965_v46  ;;  %1125 = vmatpush1.bf16.msra.mxu0 %v1091_v26  ;;  %1249 = vst [vmem:[#allocation3 + $0x28] sm:$0xf0] %v1972_v1  ;;  %v1093_v33 = vld [vmem:[#allocation3 + $0x20] sm:$0xff] }
 0x1bb   : > { %971 = vst [vmem:[#allocation3 + $0x38] sm:$0x3] %v967_v49  ;;  %1126 = vmatprep.subr.bf16.mxu0 %v1094_v32  ;;  %1248 = vst [vmem:[#allocation3 + $0x20] sm:$0xf0] %v1972_v1 }
 0x1bc   : > { %v1053_v53 = vpop.permute.xlu0 %1052 }
 0x1bd   : > { %v961_v56 = vpop.permute.xlu1 %960 }
 0x1be   : > { %v966_v51 = vsel %vm646_vm9, %v961_v56, %v963_v25  ;;  %v805_v15 = vld [vmem:[#allocation3 + $0x80] sm:$0xff]  ;;  %1127 = vmatpush1.bf16.msra.mxu0 %v1093_v33 }
 0x1bf   : > { %970 = vst [vmem:[#allocation3 + $0x30] sm:$0x3] %v966_v51  ;;  %840 = vmatpush1.bf16.msra.mxu1 %v805_v15  ;;  %1086 = vst [vmem:[#allocation3 + $0x80] sm:$0xfc] %v1972_v1 }
 0x1c0   : > { %v999_v59 = vpop.permute.xlu0 %998 }
 0x1c1   : > { %v1051_v60 = vpop.permute.xlu1 %1050 }
 0x1c2   : > { %v1055_v61 = vsel %vm747_vm15, %v1051_v60, %v1053_v53  ;;  %v1096_v62 = vld [vmem:[#allocation3 + $0x38] sm:$0xff] }
 0x1c3   : > { %1059 = vst [vmem:[#allocation3 + $0x78] sm:$0x3] %v1055_v61  ;;  %1128 = vmatprep.subr.bf16.mxu0 %v1096_v62  ;;  %1275 = vst [vmem:[#allocation3 + $0x38] sm:$0xf0] %v1972_v1  ;;  %v1491_v62 = vld [vmem:[#allocation2 + $0xc] sm:$0x3] }
 0x1c4   : > { %v1025_v29 = vpop.permute.xlu0 %1024 }
 0x1c5   : > { %v1001_v63 = vpop.permute.xlu1 %1000 }
 0x1c6   : > { %v1004_v0 = vsel %vm2731_vm6, %v999_v59, %v1001_v63  ;;  %v1005_v2 = vsel %vm2731_vm6, %v1001_v63, %v2364_v42  ;;  %v1095_v4 = vld [vmem:[#allocation3 + $0x30] sm:$0xff]  ;;  %vm1499_vm6 = vcmask 785408  }
 0x1c7   : > { %1008 = vst [vmem:[#allocation3 + $0x50] sm:$0x3] %v1004_v0  ;;  %1009 = vst [vmem:[#allocation3 + $0x58] sm:$0x3] %v1005_v2  ;;  %1129 = vmatpush1.bf16.msra.mxu0 %v1095_v4 }
 0x1c8   : > { %1274 = vst [vmem:[#allocation3 + $0x30] sm:$0xf0] %v1972_v1  ;;  %1130 = vmatprep.subr.bf16.mxu0 %v2291_v13  ;;  %v1077_v7 = vpop.permute.xlu0 %1076 }
 0x1c9   : > { %v1027_v34 = vpop.permute.xlu1 %1026 }
 0x1ca   : > { %v1030_v31 = vsel %vm592_vm1, %v1025_v29, %v1027_v34  ;;  %v1031_v44 = vsel %vm592_vm1, %v1027_v34, %v1029_v43  ;;  %v1104_v10 = vld [vmem:[#allocation3 + $0x78] sm:$0xff] }
 0x1cb   : > { %1034 = vst [vmem:[#allocation3 + $0x60] sm:$0x3] %v1030_v31  ;;  %1035 = vst [vmem:[#allocation3 + $0x68] sm:$0x3] %v1031_v44  ;;  %1131 = vmatpush1.bf16.msra.mxu0 %v2293_v14 }
 0x1cc   : > { %1363 = vst [vmem:[#allocation3 + $0x78] sm:$0xf0] %v1972_v1  ;;  %v1075_v42 = vpop.permute.xlu0 %1074 }
 0x1cd   : > { %v1080_v36 = vsel %vm527_vm12, %v1075_v42, %v1077_v7  ;;  %v1049_v12 = vpop.permute.xlu1 %1048  ;;  %v1549_v42 = vld [vmem:[#allocation2 + $0xc] sm:$0x3] }
 0x1ce   : > { %1084 = vst [vmem:[#allocation3 + $0x80] sm:$0x3] %v1080_v36  ;;  %v1054_v13 = vsel %vm747_vm15, %v1049_v12, %v1051_v60  ;;  %v1100_v16 = vld [vmem:[#allocation3 + $0x58] sm:$0xff]  ;;  %v1099_v41 = vld [vmem:[#allocation3 + $0x50] sm:$0xff]  ;;  %v1551_v36 = vsel %vm2177_vm10, %v1549_v42, -3.0173155e+38 }
 0x1cf   : > { %1058 = vst [vmem:[#allocation3 + $0x70] sm:$0x3] %v1054_v13  ;;  %1132 = vmatprep.subr.bf16.mxu0 %v1100_v16  ;;  %1313 = vst [vmem:[#allocation3 + $0x58] sm:$0xf0] %v1972_v1  ;;  %vm1514_vm10 = vcmask 1043456  }
 0x1d0   : > { %1312 = vst [vmem:[#allocation3 + $0x50] sm:$0xf0] %v1972_v1  ;;  %1133 = vmatpush1.bf16.msra.mxu0 %v1099_v41 }
 0x1d1   : > { %v1079_v45 = vpop.permute.xlu1 %1078 }
 0x1d2   : > { %v1081_v14 = vsel %vm527_vm12, %v1077_v7, %v1079_v45  ;;  %v1102_v17 = vld [vmem:[#allocation3 + $0x68] sm:$0xff]  ;;  %v1101_v26 = vld [vmem:[#allocation3 + $0x60] sm:$0xff] }
 0x1d3   : > { %1085 = vst [vmem:[#allocation3 + $0x88] sm:$0x3] %v1081_v14  ;;  %1134 = vmatprep.subr.bf16.mxu0 %v1102_v17  ;;  %1339 = vst [vmem:[#allocation3 + $0x68] sm:$0xf0] %v1972_v1 }
 0x1d4   : > { %1338 = vst [vmem:[#allocation3 + $0x60] sm:$0xf0] %v1972_v1  ;;  %1135 = vmatpush1.bf16.msra.mxu0 %v1101_v26  ;;  %v1806_v26 = vcombine.low %v2190_v48, %v2190_v48 }
 0x1d5   : > { %1136 = vmatprep.subr.bf16.mxu0 %v1104_v10  ;;  %v1105_v50 = vld [vmem:[#allocation3 + $0x80] sm:$0xff] }
 0x1d6   : > { %v1103_v20 = vld [vmem:[#allocation3 + $0x70] sm:$0xff]  ;;  %1388 = vst [vmem:[#allocation3 + $0x80] sm:$0xf0] %v1972_v1 }
 0x1d7   : > { %1362 = vst [vmem:[#allocation3 + $0x70] sm:$0xf0] %v1972_v1 }
 0x1d8   : > { %1137 = vmatpush1.bf16.msra.mxu0 %v1103_v20 }
 0x1da   : > { %v1106_v58 = vld [vmem:[#allocation3 + $0x88] sm:$0xff] }
 0x1db   : > { %1138 = vmatprep.subr.bf16.mxu0 %v1106_v58  ;;  %1389 = vst [vmem:[#allocation3 + $0x88] sm:$0xf0] %v1972_v1  ;;  %v1812_v58 = vcombine.low %v2153_v19, %v2153_v19 }
 0x1dc   : > { %1139 = vmatpush1.bf16.msra.mxu0 %v1105_v50 }
 0x1df   : > { %1155 = vmatmul.mubr.bf16.vlgmr.msra.gmra.mrb[4].mxu0 %v1786_v21  ;;  %v788_v21 = vld [vmem:[%s2714_s3] sm:$0xff] }
 0x1e0   : > { %1630 = vmatprep.mubr.bf16.mxu0 %v1972_v1  ;;  %v1756_v48 = vcombine.low %v788_v21, %v788_v21 }
 0x1e2   : > { %v1111_v22 = vpop.permute.xlu1 %1110 }
 0x2b2   : > { %v1156_v25 = vpop.f32.mrb[4].mxu0 }
 0x2b3   : > { %v1157_v27 = vadd.f32 %v1156_v25, %v1111_v22  ;;  %v1158_v18 = vpop.f32.mrb[5].mxu0 }
 0x2b4   : > { %v1159_v30 = vadd.f32 %v1158_v18, %v1111_v22  ;;  %v1160_v43 = vpop.f32.mrb[6].mxu0  ;;  %v1757_v22 = vcombine.high %v788_v21, %v788_v21 }
 0x2b5   : > { %v1163_v46 = vmax.f32 %v1157_v27, 0.0  ;;  %v1161_v32 = vpop.f32.mrb[7].mxu0 }
 0x2b6   : > { %v1164_v49 = vmax.f32 %v1159_v30, 0.0  ;;  %1758 = vmatprep.mubr.msk.bf16.mxu1 %vm572_vm4, %v1757_v22 }
 0x2b7   : > { %v2452_v24 = vpack.c.bf16 %v1163_v46, %v1163_v46  ;;  %856 = vmatmul.mubr.bf16.vlgmr.msra.gmra.mrb[0].mxu1 %v1756_v48 }
 0x2b8   : > { %v2447_v33 = vpack.c.bf16 %v1164_v49, %v1163_v46  ;;  %v2450_v53 = vpack.c.bf16 %v1164_v49, %v1164_v49 }
 0x2b9   : > { %1284 = vst [vmem:[#allocation3 + $0x40] sm:$0xf] %v2452_v24 }
 0x2ba   : > { %1173 = vst [vmem:[#allocation2 + $0x4] sm:$0xff] %v2447_v33  ;;  %1285 = vst [vmem:[#allocation3 + $0x48] sm:$0xf] %v2450_v53  ;;  %v1316_v37 = vsel %vm705_vm8, %v2447_v33, 0  ;;  %v1366_v3 = vsel %vm762_vm0, %v2447_v33, 0  ;;  %vm2747_vm0 = vcmp.ne.s16.totalorder %v2222_v35, 0 }
 0x2bb   : > { %v1808_v50 = vcombine.high %v1316_v37, %v1316_v37  ;;  %v1807_v20 = vcombine.low %v1316_v37, %v1316_v37  ;;  %v1814_v25 = vcombine.high %v1366_v3, %v1366_v3  ;;  %v1813_v27 = vcombine.low %v1366_v3, %v1366_v3 }
 0x2c1   : > { %v2456_v1 = vld [vmem:[#allocation2] sm:$0xff]  ;;  %v1175_v56 = vld [vmem:[#allocation2 + $0x8] sm:$0xf] }
 0x2c2   : > { %v2458_v51 = vld [vmem:[#allocation2 + $0x8] sm:$0xf]  ;;  %1469 = vst [vmem:[#allocation2] sm:$0x3] %v1980_v28  ;;  %v1177_v12 = vsel %vm2213_vm13, %v1175_v56, 0  ;;  %v1794_v16 = vcombine.high %v2456_v1, %v2456_v1  ;;  %v1793_v41 = vcombine.low %v2456_v1, %v2456_v1  ;;  %v1252_v45 = vsel %vm628_vm11, %v2456_v1, 0 }
 0x2c3   : > { %v1225_v15 = vld [vmem:[#allocation2 + $0x8] sm:$0xf]  ;;  %v1792_v13 = vcombine.low %v1177_v12, %v1177_v12  ;;  %v1800_v14 = vcombine.high %v1252_v45, %v1252_v45  ;;  %v1799_v17 = vcombine.low %v1252_v45, %v1252_v45  ;;  %v1795_v35 = vcombine.low %v2458_v51, %v2458_v51 }
 0x2c4   : > { %v2460_v59 = vld [vmem:[#allocation2 + $0x8] sm:$0xf]  ;;  %v1227_v40 = vsel %vm2226_vm14, %v1225_v15, 0  ;;  %vm2748_vm13 = vcmp.ne.s16.totalorder %v2249_v57, 0  ;;  %vm1559_vm14 = vcmask 1031168  }
 0x2c5   : > { %1477 = vst [vmem:[#allocation2 + $0x4] sm:$0x33] %v1833_v11  ;;  %v1798_v23 = vcombine.low %v1227_v40, %v1227_v40  ;;  %v1253_v51 = vsel %vm2238_vm2, %v2460_v59, 0 }
 0x2cc   : > { %v1490_v60 = vld [vmem:[#allocation2 + $0x4] sm:$0x33] }
 0x2cd   : > { %v1480_v61 = vld [vmem:[#allocation2 + $0x4] sm:$0x33]  ;;  %1494 = vrot.lane.b32.xlu1 %v1490_v60, %s1982_s25 }
 0x2ce   : > { %1482 = vrot.lane.b32.xlu0 %v1480_v61, %s1979_s15  ;;  %v1479_v0 = vld [vmem:[#allocation2 + $0x8] sm:$0x3]  ;;  %v1478_v4 = vld [vmem:[#allocation2] sm:$0x33]  ;;  %v1176_v61 = vsel %vm2747_vm0, %v2456_v1, 0 }
 0x2d2   : > { %1496 = vrot.lane.b32.xlu0 %v1491_v62, %s1982_s25 }
 0x33f   : > { %v1495_v29 = vpop.permute.xlu1 %1494 }
 0x340   : > { %v1483_v63 = vpop.permute.xlu0 %1482  ;;  %v1498_v2 = vrot.slane %v1495_v29, 4 }
 0x341   : > { %v1484_v7 = vrot.slane %v1483_v63, 4 }
 0x342   : > { %v1500_v11 = vsel %vm1499_vm6, %v1498_v2, %v1495_v29  ;;  %v1791_v29 = vcombine.high %v1176_v61, %v1176_v61 }
 0x343   : > { %v1485_v28 = vsel %vm747_vm15, %v1484_v7, %v1483_v63  ;;  %v1489_v34 = vmax.bf16 %v1484_v7, %v1479_v0  ;;  %v1790_v0 = vcombine.low %v1176_v61, %v1176_v61  ;;  %v1226_v7 = vsel %vm2748_vm13, %v2456_v1, 0 }
 0x344   : > { %v1488_v6 = vmax.bf16 %v1485_v28, %v1478_v4  ;;  %v1497_v8 = vpop.permute.xlu0 %1496  ;;  %v1801_v1 = vcombine.low %v1253_v51, %v1253_v51 }
 0x345   : > { %v1501_v31 = vsel %vm1499_vm6, %v1498_v2, %v1497_v8  ;;  %v1796_v8 = vcombine.low %v1226_v7, %v1226_v7 }
 0x346   : > { %v1505_v44 = vmax.bf16 %v1501_v31, %v1489_v34  ;;  %v1504_v10 = vmax.bf16 %v1500_v11, %v1488_v6  ;;  %v1797_v34 = vcombine.high %v1226_v7, %v1226_v7  ;;  %v1290_v31 = vsel %vm673_vm3, %v2447_v33, 0 }
 0x348   : > { %1510 = vrot.lane.b32.xlu0 %v1505_v44, %s2734_s16  ;;  %1508 = vrot.lane.b32.xlu1 %v1504_v10, %s2734_s16 }
 0x34c   : > { %1539 = vrot.lane.b32.xlu0 %v1505_v44, %s1977_s13  ;;  %1537 = vrot.lane.b32.xlu1 %v1504_v10, %s1977_s13  ;;  %v1805_v10 = vcombine.high %v1290_v31, %v1290_v31 }
 0x350   : > { %1556 = vrot.lane.b32.xlu0 %v1551_v36, %s1983_s30  ;;  %v1804_v36 = vcombine.low %v1290_v31, %v1290_v31 }
 0x354   : > { %1190 = vrot.lane.b32.xlu0 %v1792_v13, %s1978_s14 }
 0x358   : > { %1212 = vrot.lane.b32.xlu0 %v1794_v16, %s2734_s16 }
 0x35c   : > { %1210 = vrot.lane.b32.xlu0 %v1793_v41, %s2734_s16  ;;  %v2576_v41 = vld [vmem:[%s2718_s7] sm:$0xff] }
 0x35d   : > { %v1817_v40 = vcombine.high %v2576_v41, %v2576_v41 }
 0x35f   : > { %1818 = vmatprep.mubr.msk.bf16.mxu1 %vm572_vm4, %v1817_v40 }
 0x360   : > { %1240 = vrot.lane.b32.xlu0 %v1798_v23, %s1977_s13 }
 0x364   : > { %1264 = vrot.lane.b32.xlu0 %v1800_v14, %s2732_s12 }
 0x368   : > { %1262 = vrot.lane.b32.xlu0 %v1799_v17, %s2732_s12  ;;  %s2749_s12 = smov 1  }
 0x36c   : > { %1304 = vrot.lane.b32.xlu0 %v1806_v26, %s2745_s22 }
 0x370   : > { %1328 = vrot.lane.b32.xlu0 %v1808_v50, %s2746_s24 }
 0x374   : > { %1326 = vrot.lane.b32.xlu0 %v1807_v20, %s2746_s24 }
 0x378   : > { %1354 = vrot.lane.b32.xlu0 %v1812_v58, %s1979_s15 }
 0x37c   : > { %1378 = vrot.lane.b32.xlu0 %v1814_v25, %s1974_s29 }
 0x380   : > { %1376 = vrot.lane.b32.xlu0 %v1813_v27, %s1974_s29 }
 0x3ba   : > { %v1511_v19 = vpop.permute.xlu0 %1510  ;;  %v1509_v18 = vpop.permute.xlu1 %1508 }
 0x3bb   : > { %v1513_v30 = vrot.slane %v1511_v19, 4  ;;  %v1512_v43 = vrot.slane %v1509_v18, 4 }
 0x3bd   : > { %v1515_v46 = vsel %vm1514_vm10, %v1512_v43, %v1513_v30  ;;  %v428_v30 = vld [vmem:[%s2713_s2] sm:$0xff] }
 0x3be   : > { %v1516_v9 = vsel %vm572_vm4, %v1509_v18, %v1515_v46  ;;  %v2513_v32 = vpop.permute.xlu0 %1539 }
 0x3bf   : > { %1518 = vst [vmem:[#allocation2 + $0x4] sm:$0x33] %v1516_v9 }
 0x3c2   : > { %v2515_v49 = vpop.permute.xlu0 %1556 }
 0x3c6   : > { %v2517_v56 = vpop.permute.xlu0 %1190  ;;  %v1548_v15 = vld [vmem:[#allocation2 + $0x4] sm:$0x33] }
 0x3c7   : > { %v1550_v60 = vsel %vm673_vm3, %v1548_v15, -3.0173155e+38  ;;  %v1519_v23 = vld [vmem:[#allocation2] sm:$0x33]  ;;  %v1520_v14 = vld [vmem:[#allocation2 + $0x8] sm:$0x3] }
 0x3c8   : > { %1554 = vrot.lane.b32.xlu1 %v1550_v60, %s1983_s30  ;;  %v1536_v52 = vsel %vm2238_vm2, %v1520_v14, -3.0173155e+38 }
 0x3ca   : > { %v2525_v62 = vpop.permute.xlu0 %1212 }
 0x3cc   : > { %1188 = vrot.lane.b32.xlu1 %v1791_v29, %s1978_s14  ;;  %v2614_v29 = vpop.f32.mrb[0].mxu1 }
 0x3ce   : > { %v1211_v63 = vpop.permute.xlu0 %1210 }
 0x3cf   : > { %v1216_v2 = vsel %vm572_vm4, %v1211_v63, %v2525_v62  ;;  %v2616_v63 = vpop.f32.mrb[1].mxu1 }
 0x3d0   : > { %1220 = vst [vmem:[#allocation3 + $0x10] sm:$0xf] %v1216_v2  ;;  %1186 = vrot.lane.b32.xlu1 %v1790_v0, %s1978_s14  ;;  %v861_v0 = vpop.f32.mrb[2].mxu1 }
 0x3d2   : > { %v2531_v4 = vpop.permute.xlu0 %1240 }
 0x3d4   : > { %1214 = vrot.lane.b32.xlu1 %v1795_v35, %s2734_s16  ;;  %v862_v35 = vpop.f32.mrb[3].mxu1 }
 0x3d6   : > { %v2539_v28 = vpop.permute.xlu0 %1264 }
 0x3d8   : > { %1238 = vrot.lane.b32.xlu1 %v1797_v34, %s1977_s13 }
 0x3da   : > { %v1263_v6 = vpop.permute.xlu0 %1262 }
 0x3db   : > { %v1268_v11 = vsel %vm646_vm9, %v1263_v6, %v2539_v28 }
 0x3dc   : > { %1272 = vst [vmem:[#allocation3 + $0x30] sm:$0xf] %v1268_v11  ;;  %1236 = vrot.lane.b32.xlu1 %v1796_v8, %s1977_s13 }
 0x3de   : > { %v2548_v57 = vpop.permute.xlu0 %1304 }
 0x3e0   : > { %1266 = vrot.lane.b32.xlu1 %v1801_v1, %s2749_s12 }
 0x3e2   : > { %v2554_v44 = vpop.permute.xlu0 %1328 }
 0x3e4   : > { %1302 = vrot.lane.b32.xlu1 %v1805_v10, %s2745_s22 }
 0x3e6   : > { %v1327_v42 = vpop.permute.xlu0 %1326 }
 0x3e7   : > { %v1332_v59 = vsel %vm592_vm1, %v1327_v42, %v2554_v44 }
 0x3e8   : > { %1336 = vst [vmem:[#allocation3 + $0x60] sm:$0xf] %v1332_v59  ;;  %1300 = vrot.lane.b32.xlu1 %v1804_v36, %s2745_s22  ;;  %v1397_v59 = vld [vmem:[#allocation3 + $0x30] sm:$0xff] }
 0x3ea   : > { %v2560_v12 = vpop.permute.xlu0 %1354 }
 0x3ec   : > { %1330 = vrot.lane.b32.xlu1 %v1809_v39, %s2746_s24  ;;  %v1400_v39 = vld [vmem:[#allocation3 + $0x48] sm:$0xff]  ;;  %s1834_s24 = sshll.u32 %s2067_s21, 10 }
 0x3ed   : > { %s2661_s14 = scalar_lea.hbm %s2722_s11, %s1834_s24 }
 0x3ee   : > { %v2565_v33 = vpop.permute.xlu0 %1378 }
 0x3f0   : > { %1352 = vrot.lane.b32.xlu1 %v2450_v53, %s1979_s15  ;;  %v1538_v53 = vpop.permute.xlu1 %1537 }
 0x3f1   : > { %v1541_v45 = vrot.slane %v1538_v53, 4 }
 0x3f2   : > { %v1377_v13 = vpop.permute.xlu0 %1376 }
 0x3f3   : > { %v1382_v16 = vsel %vm527_vm12, %v1377_v13, %v2565_v33  ;;  %v1542_v26 = vsel %vm612_vm5, %v1541_v45, %v1538_v53  ;;  %v1543_v20 = vsel %vm612_vm5, %v1541_v45, %v2513_v32 }
 0x3f4   : > { %1386 = vst [vmem:[#allocation3 + $0x80] sm:$0xf] %v1382_v16  ;;  %1350 = vrot.lane.b32.xlu1 %v2452_v24, %s1979_s15  ;;  %v1535_v24 = vsel %vm628_vm11, %v1519_v23, -3.0173155e+38  ;;  %v1547_v3 = vmax.bf16 %v1543_v20, %v1536_v52  ;;  %v1399_v16 = vld [vmem:[#allocation3 + $0x40] sm:$0xff]  ;;  %s377_s15 = sand.u32 1, %s1962_s18  }
 0x3f5   : > { %v1546_v50 = vmax.bf16 %v1542_v26, %v1535_v24  ;;  %v1403_v24 = vld [vmem:[#allocation3 + $0x60] sm:$0xff]  ;;  %s1723_s30 = sshll.u32 %s377_s15, 6  ;;  %s2669_s21 = scalar_lea.sflag [#allocation5], %s377_s15 }
 0x3f6   : > { %s2646_s22 = scalar_lea.vmem [#allocation4], %s1723_s30  ;;  %s1984_s30 = smov [#allocation4]  }
 0x3f7   : > { %s1657_s25 = sshll.u32 %s2646_s22, 4  ;;  %s2663_s25 = int_to_ptr.vmem [resolvable:$true] %s1657_s25 }
 0x3f8   : > { %1380 = vrot.lane.b32.xlu1 %v1815_v38, %s1974_s29  ;;  %s1908_s29 = scalar_lea.vmem %s2663_s25, 1024 }
 0x3f9   : > { %p1909_p11 = scmp.ne.s32.totalorder %s2663_s25, %s1908_s29 }
 0x3fb   : > { %v1407_v52 = vld [vmem:[#allocation3 + $0x80] sm:$0xff]  ;;  %p1910_p12 = pnand %p1909_p11, %p2084_p5 }
 0x3fd   : > { %p1911_p13 = pneg %p1910_p12 }
 0x43a   : > { %v1555_v17 = vpop.permute.xlu1 %1554 }
 0x43b   : > { %v1558_v37 = vrot.slane %v1555_v17, 4 }
 0x43d   : > { %v1560_v58 = vsel %vm1559_vm14, %v1558_v37, %v1555_v17  ;;  %v1561_v21 = vsel %vm1559_vm14, %v1558_v37, %v2515_v49  ;;  %v1409_v49 = vld [vmem:[%s2719_s8] sm:$0xff] }
 0x43e   : > { %v1564_v48 = vmax.bf16 %v1560_v58, %v1546_v50  ;;  %v1189_v22 = vpop.permute.xlu1 %1188  ;;  %v1565_v19 = vmax.bf16 %v1561_v21, %v1547_v3  ;;  %v1816_v50 = vcombine.low %v2576_v41, %v2576_v41  ;;  %v1566_v3 = vld [vmem:[%s2720_s9] sm:$0xf] }
 0x43f   : > { %v1193_v5 = vsel %vm547_vm7, %v1189_v22, %v2517_v56  ;;  %v807_v56 = vld [vmem:[%s2715_s4] sm:$0xff] }
 0x440   : > { %1197 = vst [vmem:[#allocation3 + $0x8] sm:$0xf] %v1193_v5  ;;  %v1821_v25 = vcombine.high %v1564_v48, %v1564_v48  ;;  %v1820_v27 = vcombine.low %v1564_v48, %v1564_v48  ;;  %v1822_v43 = vcombine.low %v1565_v19, %v1565_v19 }
 0x442   : > { %1583 = vrot.lane.b32.xlu0 %v1821_v25, %s2749_s12  ;;  %1581 = vrot.lane.b32.xlu1 %v1820_v27, %s2749_s12  ;;  %v1187_v47 = vpop.permute.xlu1 %1186 }
 0x443   : > { %v1192_v18 = vsel %vm547_vm7, %v1187_v47, %v1189_v22  ;;  %vm2750_vm7 = vcmask 1039360  }
 0x444   : > { %1196 = vst [vmem:[#allocation3] sm:$0xf] %v1192_v18  ;;  %vm2751_vm2 = vmmov %vm2750_vm7 }
 0x446   : > { %432 = vperm.xlu0 %1887, %v428_v30   ;;  %1585 = vrot.lane.b32.xlu1 %v1822_v43, %s2749_s12  ;;  %v1215_v46 = vpop.permute.xlu1 %1214  ;;  %s1912_s12 = sshll.u32 %s1984_s30, 4  ;;  %s1913_s12 = int_to_ptr.vmem [resolvable:$false] %s1912_s12 }
 0x447   : > { %v1217_v9 = vsel %vm572_vm4, %v2525_v62, %v1215_v46  ;;  %v1392_v32 = vld [vmem:[#allocation3 + $0x8] sm:$0xff]  ;;  %v1567_v62 = vld [vmem:[%s2721_s10] sm:$0xff]  ;;  %s1914_s24 = scalar_lea.vmem %s1913_s12, 2048  ;;  %p1915_p0 = scmp.lt.s32.totalorder %s2663_s25, %s1913_s12 }
 0x448   : > { %1221 = vst [vmem:[#allocation3 + $0x18] sm:$0xf] %v1217_v9  ;;  %1424 = vmatprep.subr.bf16.mxu1 %v1392_v32  ;;  %p1916_p1 = scmp.lt.s32.totalorder %s1914_s24, %s1908_s29 }
 0x44a   : > { %1412 = vperm.xlu0 %1887, %v1409_v49   ;;  %810 = vperm.xlu1 %1888, %v807_v56   ;;  %v1239_v15 = vpop.permute.xlu1 %1238  ;;  %p1917_p2 = por %p1916_p1, %p1915_p0 }
 0x44b   : > { %v1243_v60 = vsel %vm612_vm5, %v1239_v15, %v2531_v4  ;;  %v1391_v61 = vld [vmem:[#allocation3] sm:$0xff]  ;;  %v1393_v4 = vld [vmem:[#allocation3 + $0x10] sm:$0xff] }
 0x44c   : > { %1247 = vst [vmem:[#allocation3 + $0x28] sm:$0xf] %v1243_v60  ;;  %1425 = vmatpush1.bf16.msra.mxu1 %v1391_v61  ;;  %p1918_p3 = pnand %p1917_p2, %p1911_p13 }
 0x44e   : > { %1570 = vperm.xlu1 %1888, %v1567_v62   ;;  %v1237_v2 = vpop.permute.xlu1 %1236 }
 0x44f   : > { %v1242_v7 = vsel %vm612_vm5, %v1237_v2, %v1239_v15  ;;  %v1394_v34 = vld [vmem:[#allocation3 + $0x18] sm:$0xff] }
 0x450   : > { %1246 = vst [vmem:[#allocation3 + $0x20] sm:$0xf] %v1242_v7  ;;  %1426 = vmatprep.subr.bf16.mxu1 %v1394_v34 }
 0x451   : > { %1427 = vmatpush1.bf16.msra.mxu1 %v1393_v4 }
 0x452   : > { %v1267_v6 = vpop.permute.xlu1 %1266 }
 0x453   : > { %v1269_v8 = vsel %vm646_vm9, %v2539_v28, %v1267_v6  ;;  %v1396_v11 = vld [vmem:[#allocation3 + $0x28] sm:$0xff] }
 0x454   : > { %1273 = vst [vmem:[#allocation3 + $0x38] sm:$0xf] %v1269_v8  ;;  %1428 = vmatprep.subr.bf16.mxu1 %v1396_v11 }
 0x456   : > { %v1303_v51 = vpop.permute.xlu1 %1302 }
 0x457   : > { %v1307_v1 = vsel %vm2750_vm7, %v1303_v51, %v2548_v57  ;;  %v1395_v31 = vld [vmem:[#allocation3 + $0x20] sm:$0xff] }
 0x458   : > { %1311 = vst [vmem:[#allocation3 + $0x58] sm:$0xf] %v1307_v1  ;;  %1429 = vmatpush1.bf16.msra.mxu1 %v1395_v31 }
 0x45a   : > { %v1301_v10 = vpop.permute.xlu1 %1300 }
 0x45b   : > { %v1306_v42 = vsel %vm2751_vm2, %v1301_v10, %v1303_v51  ;;  %v1398_v36 = vld [vmem:[#allocation3 + $0x38] sm:$0xff] }
 0x45c   : > { %1310 = vst [vmem:[#allocation3 + $0x50] sm:$0xf] %v1306_v42  ;;  %1430 = vmatprep.subr.bf16.mxu1 %v1398_v36 }
 0x45d   : > { %1431 = vmatpush1.bf16.msra.mxu1 %v1397_v59 }
 0x45e   : > { %1432 = vmatprep.subr.bf16.mxu1 %v1400_v39  ;;  %v1331_v28 = vpop.permute.xlu1 %1330 }
 0x45f   : > { %v1333_v13 = vsel %vm592_vm1, %v2554_v44, %v1331_v28  ;;  %v1402_v57 = vld [vmem:[#allocation3 + $0x58] sm:$0xff]  ;;  %vm2754_vm1 = vcmask 31744  }
 0x460   : > { %1337 = vst [vmem:[#allocation3 + $0x68] sm:$0xf] %v1333_v13 }
 0x461   : > { %1433 = vmatpush1.bf16.msra.mxu1 %v1399_v16 }
 0x462   : > { %1434 = vmatprep.subr.bf16.mxu1 %v1402_v57  ;;  %v1353_v38 = vpop.permute.xlu1 %1352 }
 0x463   : > { %v1357_v40 = vsel %vm747_vm15, %v1353_v38, %v2560_v12  ;;  %v1401_v53 = vld [vmem:[#allocation3 + $0x50] sm:$0xff] }
 0x464   : > { %1361 = vst [vmem:[#allocation3 + $0x78] sm:$0xf] %v1357_v40 }
 0x465   : > { %1435 = vmatpush1.bf16.msra.mxu1 %v1401_v53 }
 0x466   : > { %v1351_v23 = vpop.permute.xlu1 %1350 }
 0x467   : > { %v1356_v45 = vsel %vm747_vm15, %v1351_v23, %v1353_v38  ;;  %v1404_v14 = vld [vmem:[#allocation3 + $0x68] sm:$0xff] }
 0x468   : > { %1360 = vst [vmem:[#allocation3 + $0x70] sm:$0xf] %v1356_v45  ;;  %1436 = vmatprep.subr.bf16.mxu1 %v1404_v14 }
 0x469   : > { %1437 = vmatpush1.bf16.msra.mxu1 %v1403_v24 }
 0x46a   : > { %v1381_v44 = vpop.permute.xlu1 %1380 }
 0x46b   : > { %v1383_v17 = vsel %vm527_vm12, %v2565_v33, %v1381_v44  ;;  %v1406_v26 = vld [vmem:[#allocation3 + $0x78] sm:$0xff]  ;;  %vm2752_vm12 = vcmask 1041408  }
 0x46c   : > { %1387 = vst [vmem:[#allocation3 + $0x88] sm:$0xf] %v1383_v17  ;;  %1438 = vmatprep.subr.bf16.mxu1 %v1406_v26  ;;  %vm2753_vm15 = vmmov %vm2752_vm12 }
 0x46f   : > { %v1405_v37 = vld [vmem:[#allocation3 + $0x70] sm:$0xff] }
 0x470   : > { %1439 = vmatpush1.bf16.msra.mxu1 %v1405_v37 }
 0x473   : > { %v1408_v12 = vld [vmem:[#allocation3 + $0x88] sm:$0xff] }
 0x474   : > { %1440 = vmatprep.subr.bf16.mxu1 %v1408_v12 }
 0x475   : > { %1441 = vmatpush1.bf16.msra.mxu1 %v1407_v52 }
 0x478   : > { %1457 = vmatmul.mubr.bf16.vlgmr.msra.gmra.mrb[4].mxu1 %v1816_v50 }
 0x4b4   : > { %v1584_v20 = vpop.permute.xlu0 %1583  ;;  %v1582_v58 = vpop.permute.xlu1 %1581 }
 0x4b5   : > { %v1587_v21 = vsel %vm646_vm9, %v1582_v58, %v1584_v20 }
 0x4b6   : > { %v1593_v22 = vsel %vm2752_vm12, %v1587_v21, 0 }
 0x4b8   : > { %v1586_v33 = vpop.permute.xlu1 %1585 }
 0x4b9   : > { %v1588_v48 = vsel %vm646_vm9, %v1584_v20, %v1586_v33 }
 0x4ba   : > { %1823 = vmatprep.subr.msk.bf16.mxu0 %vm2753_vm15, %v1588_v48 }
 0x4bb   : > { %1599 = vmatpush1.bf16.msra.mxu0 %v1593_v22 }
 0x4be   : > { %1824 = vmatmul.mubr.msk.bf16.vlgmr.msra.gmra.mrb[8].mxu0 %vm2754_vm1, %v1566_v3 }
 0x4c5   : > { %v433_v41 = vpop.permute.xlu0 %432 }
 0x4c6   : > { %v491_v5 = vadd.f32 %v2202_v54, %v433_v41  ;;  %v493_v25 = vadd.f32 %v2204_v55, %v433_v41 }
 0x4c8   : > { %v499_v27 = vmax.f32 %v491_v5, 0.0  ;;  %v500_v19 = vmax.f32 %v493_v25, 0.0 }
 0x4c9   : > { %v811_v47 = vpop.permute.xlu1 %810  ;;  %v1413_v55 = vpop.permute.xlu0 %1412 }
 0x4ca   : > { %503 = vst [vmem:[%s2646_s22] sm:$0xff] %v499_v27  ;;  %504 = vst [vmem:[%s2646_s22 + $0x8] sm:$0xff] %v500_v19  ;;  %v858_v18 = vadd.f32 %v2614_v29, %v811_v47  ;;  %v860_v30 = vadd.f32 %v2616_v63, %v811_v47 }
 0x4cc   : > { %v864_v54 = vmax.f32 %v858_v18, 0.0  ;;  %v865_v43 = vmax.f32 %v860_v30, 0.0 }
 0x4cd   : > { %v1571_v62 = vpop.permute.xlu1 %1570 }
 0x4ce   : > { %866 = vst [vmem:[%s2646_s22 + $0x10] sm:$0xff] %v864_v54  ;;  %867 = vst [vmem:[%s2646_s22 + $0x18] sm:$0xff] %v865_v43 }
 0x54b   : > { %v1458_v46 = vpop.f32.mrb[4].mxu1 }
 0x54c   : > { %v1459_v9 = vadd.f32 %v1458_v46, %v1413_v55  ;;  %v1460_v32 = vpop.f32.mrb[5].mxu1 }
 0x54d   : > { %v1461_v49 = vadd.f32 %v1460_v32, %v1413_v55  ;;  %v1462_v56 = vpop.f32.mrb[6].mxu1 }
 0x54e   : > { %v1465_v15 = vmax.f32 %v1459_v9, 0.0  ;;  %v1463_v60 = vpop.f32.mrb[7].mxu1 }
 0x54f   : > { %v1466_v61 = vmax.f32 %v1461_v49, 0.0 }
 0x550   : > { %1467 = vst [vmem:[%s2646_s22 + $0x20] sm:$0xff] %v1465_v15 }
 0x551   : > { %1468 = vst [vmem:[%s2646_s22 + $0x28] sm:$0xff] %v1466_v61 }
 0x591   : > { %v1632_v29 = vpop.f32.mrb[8].mxu0 }
 0x592   : > { %v1633_v63 = vadd.f32 %v1632_v29, %v1571_v62  ;;  %v1634_v0 = vpop.f32.mrb[9].mxu0 }
 0x593   : > { %v1635_v2 = vadd.f32 %v1634_v0, %v1571_v62  ;;  %v1636_v35 = vpop.f32.mrb[10].mxu0 }
 0x594   : > { %v1639_v7 = vmax.f32 %v1633_v63, 0.0  ;;  %v1637_v34 = vpop.f32.mrb[11].mxu0 }
 0x595   : > { %v1640_v4 = vmax.f32 %v1635_v2, 0.0 }
 0x596   : > { %1641 = vst [vmem:[%s2646_s22 + $0x30] sm:$0xff] %v1639_v7 }
 0x597   : > { %1642 = vst [vmem:[%s2646_s22 + $0x38] sm:$0xff] %v1640_v4 }
 0x598   : > { %1921 = shalt.err (!%p1918_p3)
}
 0x599   : > { %s1922_s15 = scalar_lea.hbm %s2661_s14, 1024  ;;  %s1926_s30 = scalar_lea.hbm %s2722_s11, 2048 }
 0x59a   : > { %p1923_p4 = scmp.ne.s32.totalorder %s2661_s14, %s1922_s15  ;;  %p1927_p9 = scmp.lt.u32.totalorder %s2661_s14, %s2722_s11 }
 0x59b   : > { %p1928_p10 = scmp.lt.u32.totalorder %s1926_s30, %s1922_s15  ;;  %p1930_p12 = scmp.lt.u32.totalorder %s1922_s15, %s2661_s14 }
 0x59c   : > { %p1924_p7 = pnand %p1923_p4, %p2084_p5 }
 0x59d   : > { %p1929_p11 = por %p1928_p10, %p1927_p9 }
 0x59e   : > { %p1925_p8 = pneg %p1924_p7 }
 0x59f   : > { %p1931_p13 = por %p1930_p12, %p1929_p11 }
 0x5a1   : > { %p1932_p0 = pnand %p1931_p13, %p1925_p8 }
 0x5a3   : > { %1935 = shalt.err (!%p1932_p0)
}
 0x5a4   : > { %s1985_s29 = smov 256   ;;  %s2755_s24 = smov 16  }
 0x5a5   : > { %1835 = dma.vmem_to_hbm [thread:$0]  (%p2084_p5), %s2663_s25, 1024, %s2661_s14, %s2669_s21, %s1985_s29, %s1985_s29, %s2755_s24  }
 0x5a6 PF: > { %p1841_p1 = scmp.ge.s32.totalorder %s1970_s20, 2  ;;  %s1672_s16 = sand.u32 1, %s1958_s17  }
 0x5a7   : > { %s1673_s15 = scalar_lea.sflag [#allocation5], %s1672_s16 }
 0x5a8   : > { %p1838_p2 = pnand %p1841_p1, %p2088_p6 }
 0x5aa   : > { %1953 = dma.done.wait (!%p1838_p2), %s1673_s15, 1024  }
 0x5ab   : > { %1955 = vsyncadd (!%p1838_p2), %s1673_s15, 4294966272  ;;  %p21_p3 = scmp.ge.s32.totalorder %s2071_s23, 4   ;;  %s2756_s17 = smov %s1962_s18 }
 0x5ac   : > { %s2757_s18 = smov %s1966_s19  ;;  %s2758_s19 = smov %s2082_s26 }
 0x5ad   : > { %s2759_s20 = smov %s2071_s23  ;;  %23 = sbr.rel (!%p21_p3) target bundleno = 3 (0x3), region = 99 }
 0x5b4   :  { %1678 = vsyncpa [#allocation5], 1 }
 0x5b5   :  { %1680 = vsyncpa [#allocation5 + $0x1], 1 }

</bundles_post_ra>
